<compile_context>
chip_gen: v7x
topology: tpu7x:2x2x1
jax: 0.10.0
libtpu: 0.0.40
codegen_flags: <defaults>
</compile_context>

<pallas_src>
import functools

import jax
import jax.numpy as jnp
import numpy as np
from jax.experimental import pallas as pl
from jax.experimental.pallas import tpu as pltpu

DENSE_SAMPLING_L = 20
GROUP_ADC = 32  # ADCs per matmul group -> K = 32*20 = 640 = 5*128 lanes


def hard_sampling_kernel(x_ref, g_ref, o_ref, *, num_groups, group_adc,
                         tail_adc, l_tilde):
    """One batch tile: grouped block-diagonal selection matmuls, direct stores."""
    L = DENSE_SAMPLING_L
    gk = group_adc * L          # input lanes per full group (128-aligned for g=32)
    gn = group_adc * l_tilde    # output lanes per full group
    for gi in range(num_groups):            # static, unrolled group loop
        adc = tail_adc if gi == num_groups - 1 else group_adc
        k = adc * L
        n = adc * l_tilde
        xg = x_ref[:, gi * gk: gi * gk + k]          # (TILE_B, k) static slice
        gm = g_ref[:k, :n]                           # kron(I_adc, G) sub-block
        o_ref[:, gi * gn: gi * gn + n] = jnp.dot(
            xg, gm,
            preferred_element_type=jnp.float32,
            precision=jax.lax.Precision.HIGHEST,     # exact f32 gather
        ).astype(o_ref.dtype)


def make_selection_matrix(weight, num_of_adc_p, l_tilde):
    """Replicates HardSamplingLayer.__init__ (round + clip); builds grouped G.

    Returns (g_grp, w_idx, group_adc):
      g_grp: kron(I_group_adc, G_onehot) with group_adc = min(P, GROUP_ADC)
      w_idx: integer column indices inside each 20-wide ADC block
    """
    w = np.round(np.asarray(weight, dtype=np.float64))
    w[w < 1] = 1
    w[w > DENSE_SAMPLING_L] = DENSE_SAMPLING_L - 1
    # extra clamp of the ==20 edge case (see TODO at top of file)
    w = np.clip(w, 1, DENSE_SAMPLING_L - 1).astype(np.int64)[:l_tilde]
    g_one = np.zeros((DENSE_SAMPLING_L, l_tilde), dtype=np.float32)
    g_one[w, np.arange(l_tilde)] = 1.0
    group_adc = min(num_of_adc_p, GROUP_ADC)
    g_grp = np.kron(np.eye(group_adc, dtype=np.float32), g_one)
    return g_grp, w, group_adc


def hard_sampling_forward(x, g_grp, num_of_adc_p, l_tilde, group_adc,
                          tile_b=512):
    B, F = x.shape
    assert F == num_of_adc_p * DENSE_SAMPLING_L
    out_f = num_of_adc_p * l_tilde

    num_groups = -(-num_of_adc_p // group_adc)          # ceil(P / group_adc)
    tail_adc = num_of_adc_p - (num_groups - 1) * group_adc

    # No padding / slicing round trip: clamp the tile to B for tiny batches,
    # otherwise let Pallas handle the ragged last tile via cdiv.
    tile_b = min(tile_b, B)
    grid_b = pl.cdiv(B, tile_b)

    kernel = functools.partial(
        hard_sampling_kernel, num_groups=num_groups, group_adc=group_adc,
        tail_adc=tail_adc, l_tilde=l_tilde)

    cost = pl.CostEstimate(
        flops=2 * B * F * l_tilde,
        transcendentals=0,
        bytes_accessed=4 * (B * F + B * out_f + g_grp.size),
    )
    # Double-buffered streaming footprint + resident G + headroom; clamp so it
    # stays within the 32 MiB default scope yet never exceeds v7x's 64 MiB.
    vmem_needed = 4 * (2 * tile_b * F + 2 * tile_b * out_f + g_grp.size) + (2 << 20)
    vmem_limit = int(min(max(vmem_needed, 32 << 20), 64 << 20))

    out = pl.pallas_call(
        kernel,
        out_shape=jax.ShapeDtypeStruct((B, out_f), jnp.float32),
        grid=(grid_b,),
        in_specs=[
            # batch-tiled, double-buffered input stream
            pl.BlockSpec((tile_b, F), lambda i: (i, 0)),
            # grouped selection matrix: constant block index -> stays VMEM resident
            pl.BlockSpec(g_grp.shape, lambda i: (0, 0)),
        ],
        out_specs=pl.BlockSpec((tile_b, out_f), lambda i: (i, 0)),
        compiler_params=pltpu.CompilerParams(
            dimension_semantics=("parallel",),
            vmem_limit_bytes=vmem_limit),
        cost_estimate=cost,
    )(x, g_grp)
    return out


def hard_sampling_reference(x_np, w_idx, num_of_adc_p, l_tilde):
    # pure-numpy mirror of the PyTorch forward
    cols = np.concatenate(
        [i * DENSE_SAMPLING_L + w_idx for i in range(num_of_adc_p)])
    return x_np[:, cols]


if __name__ == "__main__":
    # small, forward-consistent hyperparameters
    num_of_adc_p = 4
    num_samples_L_tilde = 8
    batch = 1024          # with tile_b=512 -> 2 grid steps (feeds both v7x TCs)
    tile_b = 512

    # raw (pre-rounding) sampling weights; exercises both clip branches (<1, >20)
    weight_raw = np.linspace(-2.0, 23.0, num_samples_L_tilde)
    g_np, w_idx, group_adc = make_selection_matrix(
        weight_raw, num_of_adc_p, num_samples_L_tilde)
    g = jnp.asarray(g_np)

    key = jax.random.PRNGKey(0)
    x = jax.random.normal(
        key, (batch, num_of_adc_p * DENSE_SAMPLING_L), dtype=jnp.float32)

    out = hard_sampling_forward(x, g, num_of_adc_p, num_samples_L_tilde,
                                group_adc, tile_b=tile_b)
    out = jax.block_until_ready(out)

    ref = hard_sampling_reference(np.asarray(x), w_idx, num_of_adc_p,
                                  num_samples_L_tilde)
    np.testing.assert_allclose(np.asarray(out), ref, rtol=0, atol=1e-6)
    assert out.shape == (batch, num_of_adc_p * num_samples_L_tilde)
    print("KERNEL_OK")
</pallas_src>

<mosaic_0001>
module attributes {stable_mosaic.version = 11 : i64} {
  func.func @hard_sampling_kernel(%arg0: i32, %arg1: memref<512x80xf32, #tpu.memory_space<vmem>>, %arg2: memref<80x32xf32, #tpu.memory_space<vmem>>, %arg3: memref<512x32xf32, #tpu.memory_space<vmem>>) attributes {dimension_semantics = [#tpu.dimension_semantics<parallel>], iteration_bounds = array<i64: 2>, scalar_prefetch = 0 : i64, scratch_operands = 0 : i64, tpu.core_type = #tpu.core_type<tc>, window_params = [{transform_indices = @transform_0, window_bounds = array<i64: 512, 80>}, {pipeline_mode = #tpu.pipeline_mode<synchronous>, transform_indices = @transform_1, window_bounds = array<i64: 80, 32>}, {transform_indices = @transform_2, window_bounds = array<i64: 512, 32>}]} {
    %c0 = arith.constant 0 : index
    %c0_0 = arith.constant 0 : index
    %0 = vector.load %arg1[%c0, %c0_0] : memref<512x80xf32, #tpu.memory_space<vmem>>, vector<512x80xf32>
    %c0_1 = arith.constant 0 : index
    %c0_2 = arith.constant 0 : index
    %1 = vector.load %arg2[%c0_1, %c0_2] : memref<80x32xf32, #tpu.memory_space<vmem>>, vector<80x32xf32>
    %cst = arith.constant dense<0.000000e+00> : vector<512x32xf32>
    %2 = tpu.matmul %0, %1, %cst {dimension_numbers = #tpu.dot_dimension_numbers<[1], [0], [0], [1], [0, 0, 1, 1], [], []>, precision = #tpu.contract_precision<fp32>} : vector<512x80xf32>, vector<80x32xf32>, vector<512x32xf32> -> vector<512x32xf32>
    %c0_3 = arith.constant 0 : index
    %c0_4 = arith.constant 0 : index
    %3 = vector.load %arg3[%c0_3, %c0_4] : memref<512x32xf32, #tpu.memory_space<vmem>>, vector<512x32xf32>
    tpu.vector_store %arg3[%c0_3, %c0_4], %2 {strides = array<i32>} : memref<512x32xf32, #tpu.memory_space<vmem>>, vector<512x32xf32>,
    return
  }
  func.func @transform_0(%arg0: i32) -> (i32, i32) {
    %c0_i32 = arith.constant 0 : i32
    %c0_i32_0 = arith.constant 0 : i32
    return %arg0, %c0_i32 : i32, i32
  }
  func.func @transform_1(%arg0: i32) -> (i32, i32) {
    %c0_i32 = arith.constant 0 : i32
    %c0_i32_0 = arith.constant 0 : i32
    %c0_i32_1 = arith.constant 0 : i32
    return %c0_i32, %c0_i32_0 : i32, i32
  }
  func.func @transform_2(%arg0: i32) -> (i32, i32) {
    %c0_i32 = arith.constant 0 : i32
    %c0_i32_0 = arith.constant 0 : i32
    return %arg0, %c0_i32 : i32, i32
  }
}

</mosaic_0001>

<bundles_post_ra>
// kernel: tpu_custom_call.1
= control target key start
LH: loop header
LB: loop body
LE: loop exit
PB: predicated region body
PF: predicated region fallthrough
CT: control target
= control target key end

     0   :  { %s5429_s9 = smov 0   ;;  %s6735_s0 = inlined_call_operand.vmem [shape: f32[1024,80], index: 0, kind: input, shape index: {}]   ;;  %s6736_s1 = inlined_call_operand.vmem [shape: f32[80,32], index: 1, kind: input, shape index: {}]   ;;  %s6737_s2 = inlined_call_operand.vmem [shape: f32[1024,32], index: 2, kind: output, shape index: {}]  }
   0x1 LB: > { %s3807_s10 = sadd.s32 4294967295, %s5412_s9   ;;  %p3811_p0 = scmp.ge.s32.totalorder %s5412_s9, 1  ;;  %s5412_s9 = sphi %s5429_s9, %s12_s9  }
   0x2   : > { %p113_p1 = scmp.lt.s32.totalorder %s5412_s9, 3 }
   0x4   : > { %p114_p2 = pnand %p3811_p0, %p113_p1 }
   0x6   : > { %117 = sbr.rel (%p114_p2) target bundleno = 634 (0x27a), region = 28 }
   0xd   : > { %v211_v0 = vld [vmem:[%s6736_s1] sm:$0xff]  ;;  %v212_v1 = vld [vmem:[%s6736_s1 + $0x8] sm:$0xff]  ;;  %v213_v2 = vld [vmem:[%s6736_s1 + $0x10] sm:$0xff]  ;;  %s3812_s17 = sshll.u32 %s3807_s10, 6  ;;  %vm221_vm0 = vcmask 654336   ;;  %vm3686_vm1 = vcmask 261120  }
   0xe   : > { %v415_v3 = vand.u32 4294901760, %v211_v0  ;;  %v418_v4 = vand.u32 4294901760, %v212_v1  ;;  %v214_v5 = vld [vmem:[%s6736_s1 + $0x18] sm:$0xff]  ;;  %v421_v6 = vand.u32 4294901760, %v213_v2  ;;  %v5452_v7 = vld [vmem:[%s6736_s1 + $0x20] sm:$0xff]  ;;  %v5457_v8 = vld [vmem:[%s6736_s1 + $0x28] sm:$0xff] }
   0xf   : > { %v424_v9 = vand.u32 4294901760, %v214_v5  ;;  %v5462_v10 = vld [vmem:[%s6736_s1 + $0x30] sm:$0xff]  ;;  %v5467_v11 = vld [vmem:[%s6736_s1 + $0x38] sm:$0xff]  ;;  %v5472_v12 = vld [vmem:[%s6736_s1 + $0x40] sm:$0xff]  ;;  %v6743_v14 = vand.u32 4294901760, %v5452_v7  ;;  %v6742_v15 = vand.u32 4294901760, %v5457_v8 }
  0x10   : > { %v5474_v13 = vpack.c.bf16 %v418_v4, %v415_v3  ;;  %v5481_v16 = vld [vmem:[%s6736_s1 + $0x48] sm:$0xff]  ;;  %p136_p3 = scmp.lt.s32.totalorder %s3812_s17, 127  ;;  %v6741_v18 = vand.u32 4294901760, %v5462_v10  ;;  %v5486_v19 = vsub.f32 %v211_v0, %v415_v3  ;;  %v6740_v20 = vand.u32 4294901760, %v5467_v11 }
  0x11   : > { %v5483_v17 = vpack.c.bf16 %v424_v9, %v421_v6  ;;  %v6739_v21 = vand.u32 4294901760, %v5472_v12  ;;  %v6738_v22 = vand.u32 4294901760, %v5481_v16  ;;  %v5495_v23 = vsub.f32 %v212_v1, %v418_v4 }
  0x12   : > { %4959 = vmatprep.subr.bf16.mxu1 %v5474_v13  ;;  %5019 = vmatprep.subr.bf16.mxu0 %v5474_v13  ;;  %s7173_s17 = smov (!%p136_p3, %s3812_s17), 127  ;;  %v1132_v24 = vand.u32 4294901760, %v5486_v19  ;;  %v5500_v25 = vsub.f32 %v213_v2, %v421_v6  ;;  %v5508_v26 = vpack.c.bf16 %v6742_v15, %v6743_v14  ;;  %v5528_v29 = vpack.c.bf16 %v6740_v20, %v6741_v18 }
  0x13   : > { %4961 = vmatpush3.bf16.msra.mxu1 %v5474_v13  ;;  %5021 = vmatpush3.bf16.msra.mxu0 %v5474_v13  ;;  %s3813_s4 = sshll.u32 %s7173_s17, 3  ;;  %v1139_v27 = vand.u32 4294901760, %v5495_v23  ;;  %v5534_v30 = vpack.c.bf16 %v6738_v22, %v6739_v21  ;;  %v5542_v35 = vsub.f32 %v214_v5, %v424_v9 }
  0x14   : > { %4963 = vmatprep.subr.bf16.mxu1 %v5483_v17  ;;  %5023 = vmatprep.subr.bf16.mxu0 %v5483_v17  ;;  %s5517_s7 = scalar_lea.vmem %s6735_s0, %s3813_s4  ;;  %v5522_v28 = vsub.f32 %v5486_v19, %v1132_v24  ;;  %v1146_v41 = vand.u32 4294901760, %v5500_v25  ;;  %s6602_s11 = scalar_lea.vmem %s6737_s2, %s3813_s4 }
  0x15   : > { %v147_v31 = vld [vmem:[%s5517_s7] sm:$0xff]  ;;  %v148_v32 = vld [vmem:[%s5517_s7 + $0x8] sm:$0xff]  ;;  %v1140_v33 = vsub.f32 %v5495_v23, %v1139_v27  ;;  %v149_v34 = vld [vmem:[%s5517_s7 + $0x10] sm:$0xff] }
  0x16   : > { %v223_v36 = vsel %vm221_vm0, %v147_v31, 0  ;;  %v226_v37 = vsel %vm221_vm0, %v148_v32, 0  ;;  %v229_v38 = vsel %vm221_vm0, %v149_v34, 0  ;;  %v150_v39 = vld [vmem:[%s5517_s7 + $0x18] sm:$0xff]  ;;  %v151_v40 = vld [vmem:[%s5517_s7 + $0x20] sm:$0xff]  ;;  %v1134_v44 = vand.u32 4294901760, %v5522_v28 }
  0x17   : > { %4965 = vmatpush3.bf16.msra.mxu1 %v5483_v17  ;;  %5025 = vmatpush3.bf16.msra.mxu0 %v5483_v17  ;;  %v5554_v42 = vand.u32 4294901760, %v223_v36  ;;  %v5556_v43 = vand.u32 4294901760, %v226_v37  ;;  %v5559_v45 = vand.u32 4294901760, %v229_v38  ;;  %v152_v46 = vld [vmem:[%s5517_s7 + $0x28] sm:$0xff]  ;;  %v153_v47 = vld [vmem:[%s5517_s7 + $0x30] sm:$0xff]  ;;  %v232_v48 = vsel %vm221_vm0, %v150_v39, 0 }
  0x18   : > { %4967 = vmatprep.subr.bf16.mxu1 %v5508_v26  ;;  %5027 = vmatprep.subr.bf16.mxu0 %v5508_v26  ;;  %v235_v49 = vsel %vm221_vm0, %v151_v40, 0  ;;  %v238_v50 = vsel %vm221_vm0, %v152_v46, 0  ;;  %v241_v51 = vsel %vm221_vm0, %v153_v47, 0  ;;  %v154_v52 = vld [vmem:[%s5517_s7 + $0x38] sm:$0xff]  ;;  %v1141_v55 = vand.u32 4294901760, %v1140_v33  ;;  %v155_v31 = vld [vmem:[%s5517_s7 + $0x40] sm:$0xff] }
  0x19   : > { %v5569_v53 = vsub.f32 %v223_v36, %v5554_v42  ;;  %v5572_v54 = vsub.f32 %v226_v37, %v5556_v43  ;;  %v5575_v56 = vsub.f32 %v229_v38, %v5559_v45  ;;  %v5579_v57 = vand.u32 4294901760, %v232_v48  ;;  %v156_v37 = vld [vmem:[%s5517_s7 + $0x48] sm:$0xff]  ;;  %v157_v38 = vld [vmem:[%s5517_s7 + $0x50] sm:$0xff] }
  0x1a   : > { %v5581_v58 = vand.u32 4294901760, %v235_v49  ;;  %v5583_v59 = vand.u32 4294901760, %v238_v50  ;;  %v5585_v60 = vand.u32 4294901760, %v241_v51  ;;  %v244_v0 = vsel %vm221_vm0, %v154_v52, 0 }
  0x1b   : > { %6896 = vst [vmem:[#allocation2_spill] sm:$0xff] %v5569_v53  ;;  %6897 = vst [vmem:[#allocation3_spill] sm:$0xff] %v5572_v54  ;;  %4969 = vmatpush3.bf16.msra.mxu1 %v5508_v26  ;;  %5029 = vmatpush3.bf16.msra.mxu0 %v5508_v26  ;;  %v491_v61 = vand.u32 4294901760, %v5569_v53  ;;  %v501_v62 = vand.u32 4294901760, %v5572_v54  ;;  %v511_v63 = vand.u32 4294901760, %v5575_v56  ;;  %v5594_v1 = vsub.f32 %v232_v48, %v5579_v57 }
  0x1c   : > { %6898 = vst [vmem:[#allocation4_spill] sm:$0xff] %v5575_v56  ;;  %4971 = vmatprep.subr.bf16.mxu1 %v5528_v29  ;;  %5031 = vmatprep.subr.bf16.mxu0 %v5528_v29  ;;  %v5597_v2 = vsub.f32 %v235_v49, %v5581_v58  ;;  %v5600_v3 = vsub.f32 %v238_v50, %v5583_v59  ;;  %v5610_v28 = vand.u32 4294901760, %v244_v0  ;;  %v1153_v50 = vand.u32 4294901760, %v5542_v35 }
  0x1d   : > { %6899 = vst [vmem:[#allocation5_spill] sm:$0xff] %v5594_v1  ;;  %v5603_v4 = vsub.f32 %v241_v51, %v5585_v60  ;;  %v492_v5 = vsub.f32 %v5569_v53, %v491_v61  ;;  %4630 = vmatprep.mubr.f32.mxu0 %v491_v61  ;;  %v502_v6 = vsub.f32 %v5572_v54, %v501_v62  ;;  %v521_v32 = vand.u32 4294901760, %v5594_v1  ;;  %v170_v53 = vld [vmem:[%s5517_s7 + $0xb8] sm:$0xff] }
  0x1e   : > { %6900 = vst [vmem:[#allocation6_spill] sm:$0xff] %v5597_v2  ;;  %6901 = vst [vmem:[#allocation7_spill] sm:$0xff] %v5600_v3  ;;  %v512_v9 = vsub.f32 %v5575_v56, %v511_v63  ;;  %v531_v33 = vand.u32 4294901760, %v5597_v2  ;;  %v6745_v34 = vand.u32 4294901760, %v5600_v3  ;;  %v4978_v40 = vpack.c.bf16 %v1141_v55, %v1134_v44  ;;  %v159_v55 = vld [vmem:[%s5517_s7 + $0x60] sm:$0xff]  ;;  %v168_v56 = vld [vmem:[%s5517_s7 + $0xa8] sm:$0xff] }
  0x1f   : > { %6902 = vst [vmem:[#allocation8_spill] sm:$0xff] %v5603_v4  ;;  %4973 = vmatpush3.bf16.msra.mxu1 %v5528_v29  ;;  %5033 = vmatpush3.bf16.msra.mxu0 %v5528_v29  ;;  %v6744_v36 = vand.u32 4294901760, %v5603_v4  ;;  %v493_v39 = vand.u32 4294901760, %v492_v5  ;;  %v5038_v46 = vpack.c.bf16 %v1139_v27, %v1132_v24  ;;  %v5628_v47 = vsub.f32 %v244_v0, %v5610_v28  ;;  %v158_v27 = vld [vmem:[%s5517_s7 + $0x58] sm:$0xff] }
  0x20   : > { %4975 = vmatprep.subr.bf16.mxu1 %v5534_v30  ;;  %5035 = vmatprep.subr.bf16.mxu0 %v5534_v30  ;;  %v522_v48 = vsub.f32 %v5594_v1, %v521_v32  ;;  %v532_v49 = vsub.f32 %v5597_v2, %v531_v33  ;;  %v503_v51 = vand.u32 4294901760, %v502_v6  ;;  %v247_v44 = vsel %vm221_vm0, %v155_v31, 0  ;;  %v160_v6 = vld [vmem:[%s5517_s7 + $0x68] sm:$0xff] }
  0x21   : > { %6903 = vst [vmem:[#allocation9_spill] sm:$0xff] %v5628_v47  ;;  %4282 = vmatprep.mubr.f32.mxu1 %v493_v39  ;;  %v250_v52 = vsel %vm221_vm0, %v156_v37, 0  ;;  %v253_v24 = vsel %vm221_vm0, %v157_v38, 0  ;;  %v513_v61 = vand.u32 4294901760, %v512_v9  ;;  %v542_v0 = vsub.f32 %v5600_v3, %v6745_v34 }
  0x22   : > { %v5648_v5 = vsub.f32 %v5603_v4, %v6744_v36  ;;  %v1147_v31 = vsub.f32 %v5500_v25, %v1146_v41  ;;  %v6746_v37 = vand.u32 4294901760, %v5628_v47  ;;  %v5655_v38 = vand.u32 4294901760, %v247_v44 }
  0x23   : > { %4977 = vmatpush3.bf16.msra.mxu1 %v5534_v30  ;;  %5037 = vmatpush3.bf16.msra.mxu0 %v5534_v30  ;;  %v5657_v9 = vand.u32 4294901760, %v250_v52  ;;  %v5659_v39 = vand.u32 4294901760, %v253_v24  ;;  %v523_v22 = vand.u32 4294901760, %v522_v48  ;;  %v533_v21 = vand.u32 4294901760, %v532_v49 }
  0x24   : > { %4979 = vmatprep.subr.bf16.mxu1 %v4978_v40  ;;  %5039 = vmatprep.subr.bf16.mxu0 %v5038_v46  ;;  %v256_v20 = vsel %vm221_vm0, %v158_v27, 0  ;;  %v259_v18 = vsel %vm221_vm0, %v159_v55, 0  ;;  %v5664_v15 = vsub.f32 %v247_v44, %v5655_v38  ;;  %v262_v34 = vsel %vm221_vm0, %v160_v6, 0 }
  0x25   : > { %v5667_v14 = vsub.f32 %v250_v52, %v5657_v9  ;;  %v5670_v36 = vsub.f32 %v253_v24, %v5659_v39  ;;  %v5673_v48 = vand.u32 4294901760, %v256_v20  ;;  %v5675_v49 = vand.u32 4294901760, %v259_v18 }
  0x26   : > { %4283 = vmatmul.mubr.f32.vlgmr.msra.gmra.mrb[0].mxu1 %v503_v51  ;;  %4631 = vmatmul.mubr.f32.vlgmr.msra.gmra.mrb[0].mxu0 %v501_v62  ;;  %6904 = vst [vmem:[#allocation10_spill] sm:$0xff] %v5664_v15  ;;  %v1148_v27 = vand.u32 4294901760, %v1147_v31  ;;  %v1154_v62 = vsub.f32 %v5542_v35, %v1153_v50  ;;  %v161_v51 = vld [vmem:[%s5517_s7 + $0x70] sm:$0xff]  ;;  %v562_v44 = vsub.f32 %v5628_v47, %v6746_v37  ;;  %v5689_v55 = vand.u32 4294901760, %v262_v34  ;;  %v162_v37 = vld [vmem:[%s5517_s7 + $0x78] sm:$0xff] }
  0x27   : > { %6905 = vst [vmem:[#allocation11_spill] sm:$0xff] %v5667_v14  ;;  %6906 = vst [vmem:[#allocation12_spill] sm:$0xff] %v5670_v36  ;;  %4981 = vmatpush3.bf16.msra.mxu1 %v4978_v40  ;;  %5041 = vmatpush3.bf16.msra.mxu0 %v5038_v46  ;;  %v571_v40 = vand.u32 4294901760, %v5664_v15  ;;  %v5042_v46 = vpack.c.bf16 %v1153_v50, %v1146_v41  ;;  %v6747_v52 = vand.u32 4294901760, %v5667_v14  ;;  %v265_v31 = vsel %vm221_vm0, %v161_v51, 0 }
  0x28   : > { %4285 = vmatprep.mubr.f32.mxu1 %v513_v61  ;;  %4633 = vmatprep.mubr.f32.mxu0 %v511_v63  ;;  %6907 = vst [vmem:[#allocation13_spill] sm:$0xff] %v5689_v55  ;;  %v1155_v61 = vand.u32 4294901760, %v1154_v62  ;;  %v543_v63 = vand.u32 4294901760, %v542_v0  ;;  %v5692_v6 = vsub.f32 %v256_v20, %v5673_v48  ;;  %v553_v41 = vand.u32 4294901760, %v5648_v5  ;;  %v164_v0 = vld [vmem:[%s5517_s7 + $0x88] sm:$0xff] }
  0x29   : > { %v572_v50 = vsub.f32 %v5664_v15, %v571_v40  ;;  %v5701_v62 = vsub.f32 %v259_v18, %v5675_v49  ;;  %v563_v20 = vand.u32 4294901760, %v562_v44  ;;  %5043 = vmatprep.subr.bf16.mxu0 %v5042_v46  ;;  %v5705_v24 = vand.u32 4294901760, %v265_v31 }
  0x2a   : > { %4286 = vmatmul.mubr.f32.gmra.mrb[2].mxu1 %v523_v22  ;;  %4634 = vmatmul.mubr.f32.gmra.mrb[2].mxu0 %v521_v32  ;;  %6908 = vst [vmem:[#allocation14_spill] sm:$0xff] %v5692_v6  ;;  %v4982_v22 = vpack.c.bf16 %v1155_v61, %v1148_v27  ;;  %v163_v32 = vld [vmem:[%s5517_s7 + $0x80] sm:$0xff]  ;;  %v5714_v51 = vsub.f32 %v262_v34, %v5689_v55  ;;  %v268_v18 = vsel %vm221_vm0, %v162_v37, 0  ;;  %v165_v27 = vld [vmem:[%s5517_s7 + $0x90] sm:$0xff]  ;;  %v6913_v44 = vand.u32 4294901760, %v5600_v3  ;;  %v166_v3 = vld [vmem:[%s5517_s7 + $0x98] sm:$0xff] }
  0x2b   : > { %4288 = vmatprep.mubr.f32.mxu1 %v533_v21  ;;  %4636 = vmatprep.mubr.f32.mxu0 %v531_v33  ;;  %6909 = vst [vmem:[#allocation15_spill] sm:$0xff] %v5701_v62  ;;  %6910 = vst [vmem:[#allocation16_spill] sm:$0xff] %v5705_v24  ;;  %v582_v21 = vsub.f32 %v5667_v14, %v6747_v52  ;;  %v6911_v33 = vand.u32 4294901760, %v5670_v36  ;;  %v601_v61 = vand.u32 4294901760, %v5692_v6  ;;  %v5721_v52 = vand.u32 4294901760, %v268_v18 }
  0x2c   : > { %6912 = vst [vmem:[#allocation17_spill] sm:$0xff] %v5714_v51  ;;  %4983 = vmatprep.subr.bf16.mxu1 %v4982_v22  ;;  %5045 = vmatpush3.bf16.msra.mxu0 %v5042_v46  ;;  %v274_v34 = vsel %vm221_vm0, %v164_v0, 0  ;;  %v6915_v15 = vand.u32 4294901760, %v5603_v4  ;;  %v573_v46 = vand.u32 4294901760, %v572_v50  ;;  %v611_v37 = vand.u32 4294901760, %v5701_v62  ;;  %v167_v0 = vld [vmem:[%s5517_s7 + $0xa0] sm:$0xff] }
  0x2d   : > { %v592_v5 = vsub.f32 %v5670_v36, %v6911_v33  ;;  %6914 = vst [vmem:[#allocation18_spill] sm:$0xff] %v5721_v52  ;;  %v271_v33 = vsel %vm221_vm0, %v163_v32, 0  ;;  %4985 = vmatpush3.bf16.msra.mxu1 %v4982_v22  ;;  %v5735_v2 = vsub.f32 %v268_v18, %v5721_v52  ;;  %v5737_v32 = vand.u32 4294901760, %v274_v34 }
  0x2e   : > { %4289 = vmatmul.mubr.f32.gmra.mrb[4].mxu1 %v543_v63  ;;  %4637 = vmatmul.mubr.f32.gmra.mrb[4].mxu0 %v6913_v44  ;;  %v5729_v63 = vsub.f32 %v265_v31, %v5705_v24  ;;  %v5731_v44 = vand.u32 4294901760, %v271_v33  ;;  %v6921_v31 = vand.u32 4294901760, %v5628_v47  ;;  %v583_v4 = vand.u32 4294901760, %v582_v21 }
  0x2f   : > { %4291 = vmatprep.mubr.f32.mxu1 %v553_v41  ;;  %4639 = vmatprep.mubr.f32.mxu0 %v6915_v15  ;;  %6918 = vst [vmem:[#allocation21_spill] sm:$0xff] %v5735_v2  ;;  %6919 = vst [vmem:[#allocation22_spill] sm:$0xff] %v5737_v32  ;;  %v277_v41 = vsel %vm221_vm0, %v165_v27, 0  ;;  %v602_v22 = vsub.f32 %v5692_v6, %v601_v61  ;;  %v280_v18 = vsel %vm221_vm0, %v166_v3, 0  ;;  %v593_v27 = vand.u32 4294901760, %v592_v5 }
  0x30   : > { %6916 = vst [vmem:[#allocation19_spill] sm:$0xff] %v5729_v63  ;;  %6917 = vst [vmem:[#allocation20_spill] sm:$0xff] %v5731_v44  ;;  %v5743_v50 = vsub.f32 %v271_v33, %v5731_v44  ;;  %v5748_v1 = vand.u32 4294901760, %v277_v41  ;;  %v612_v15 = vsub.f32 %v5701_v62, %v611_v37  ;;  %v631_v33 = vand.u32 4294901760, %v5729_v63 }
  0x31   : > { %v5757_v21 = vsub.f32 %v274_v34, %v5737_v32  ;;  %v6924_v6 = vand.u32 4294901760, %v5452_v7  ;;  %v5768_v62 = vand.u32 4294901760, %v280_v18  ;;  %v6927_v34 = vand.u32 4294901760, %v5667_v14 }
  0x32   : > { %6920 = vst [vmem:[#allocation23_spill] sm:$0xff] %v5743_v50  ;;  %4292 = vmatmul.mubr.f32.gmra.mrb[6].mxu1 %v563_v20  ;;  %4640 = vmatmul.mubr.f32.gmra.mrb[6].mxu0 %v6921_v31  ;;  %6922 = vst [vmem:[#allocation24_spill] sm:$0xff] %v5748_v1  ;;  %v283_v20 = vsel %vm221_vm0, %v167_v0, 0  ;;  %v286_v0 = vsel %vm221_vm0, %v168_v56, 0  ;;  %v169_v31 = vld [vmem:[%s5517_s7 + $0xb0] sm:$0xff]  ;;  %v603_v47 = vand.u32 4294901760, %v602_v22  ;;  %v632_v54 = vsub.f32 %v5729_v63, %v631_v33 }
  0x33   : > { %4294 = vmatprep.mubr.f32.mxu1 %v573_v46  ;;  %4642 = vmatprep.mubr.f32.mxu0 %v571_v40  ;;  %6923 = vst [vmem:[#allocation25_spill] sm:$0xff] %v5757_v21  ;;  %v5762_v3 = vsub.f32 %v5452_v7, %v6924_v6  ;;  %v6925_v40 = vand.u32 4294901760, %v5714_v51  ;;  %6926 = vst [vmem:[#allocation26_spill] sm:$0xff] %v5768_v62  ;;  %v5775_v7 = vsub.f32 %v277_v41, %v5748_v1  ;;  %v171_v56 = vld [vmem:[%s5517_s7 + $0xc0] sm:$0xff] }
  0x34   : > { %v5777_v6 = vand.u32 4294901760, %v283_v20  ;;  %v613_v46 = vand.u32 4294901760, %v612_v15  ;;  %v6932_v22 = vand.u32 4294901760, %v5735_v2  ;;  %v289_v15 = vsel %vm221_vm0, %v169_v31, 0 }
  0x35   : > { %v622_v5 = vsub.f32 %v5714_v51, %v6925_v40  ;;  %6928 = vst [vmem:[#allocation27_spill] sm:$0xff] %v5775_v7  ;;  %v6930_v40 = vand.u32 4294901760, %v5670_v36  ;;  %v6934_v63 = vand.u32 4294901760, %v5743_v50  ;;  %v5800_v1 = vsub.f32 %v280_v18, %v5768_v62 }
  0x36   : > { %4295 = vmatmul.mubr.f32.gmra.mrb[8].mxu1 %v583_v4  ;;  %4643 = vmatmul.mubr.f32.gmra.mrb[8].mxu0 %v6927_v34  ;;  %6929 = vst [vmem:[#allocation28_spill] sm:$0xff] %v5777_v6  ;;  %v6931_v4 = vand.u32 4294901760, %v5457_v8  ;;  %v642_v41 = vsub.f32 %v5735_v2, %v6932_v22  ;;  %v5805_v22 = vsub.f32 %v283_v20, %v5777_v6  ;;  %v292_v31 = vsel %vm221_vm0, %v170_v53, 0  ;;  %v172_v34 = vld [vmem:[%s5517_s7 + $0xc8] sm:$0xff]  ;;  %v173_v6 = vld [vmem:[%s5517_s7 + $0xd0] sm:$0xff]  ;;  %v174_v53 = vld [vmem:[%s5517_s7 + $0xd8] sm:$0xff] }
  0x37   : > { %4297 = vmatprep.mubr.f32.mxu1 %v593_v27  ;;  %4645 = vmatprep.mubr.f32.mxu0 %v6930_v40  ;;  %v5793_v27 = vand.u32 4294901760, %v286_v0  ;;  %v623_v40 = vand.u32 4294901760, %v622_v5  ;;  %v652_v36 = vsub.f32 %v5743_v50, %v6934_v63  ;;  %6935 = vst [vmem:[#allocation30_spill] sm:$0xff] %v5800_v1  ;;  %v295_v5 = vsel %vm221_vm0, %v171_v56, 0 }
  0x38   : > { %v5787_v14 = vsub.f32 %v5457_v8, %v6931_v4  ;;  %v1160_v8 = vand.u32 4294901760, %v5762_v3  ;;  %6936 = vst [vmem:[#allocation31_spill] sm:$0xff] %v5805_v22  ;;  %v633_v63 = vand.u32 4294901760, %v632_v54  ;;  %v5809_v18 = vand.u32 4294901760, %v289_v15 }
  0x39   : > { %6933 = vst [vmem:[#allocation29_spill] sm:$0xff] %v5793_v27  ;;  %v5817_v20 = vsub.f32 %v286_v0, %v5793_v27  ;;  %v653_v32 = vand.u32 4294901760, %v652_v36  ;;  %v5824_v54 = vand.u32 4294901760, %v295_v5  ;;  %v6942_v56 = vand.u32 4294901760, %v5714_v51 }
  0x3a   : > { %4298 = vmatmul.mubr.f32.gmra.mrb[10].mxu1 %v603_v47  ;;  %4646 = vmatmul.mubr.f32.gmra.mrb[10].mxu0 %v601_v61  ;;  %6937 = vst [vmem:[#allocation32_spill] sm:$0xff] %v5809_v18  ;;  %v1167_v62 = vand.u32 4294901760, %v5787_v14  ;;  %v643_v47 = vand.u32 4294901760, %v642_v41  ;;  %v6938_v61 = vand.u32 4294901760, %v5757_v21  ;;  %v6943_v41 = vand.u32 4294901760, %v5775_v7 }
  0x3b   : > { %4300 = vmatprep.mubr.f32.mxu1 %v613_v46  ;;  %4648 = vmatprep.mubr.f32.mxu0 %v611_v37  ;;  %6939 = vst [vmem:[#allocation33_spill] sm:$0xff] %v5817_v20  ;;  %v5822_v37 = vand.u32 4294901760, %v292_v31  ;;  %6941 = vst [vmem:[#allocation35_spill] sm:$0xff] %v5824_v54  ;;  %v298_v27 = vsel %vm221_vm0, %v172_v34, 0  ;;  %v1161_v36 = vsub.f32 %v5762_v3, %v1160_v8 }
  0x3c   : > { %v662_v4 = vsub.f32 %v5757_v21, %v6938_v61  ;;  %v672_v61 = vsub.f32 %v5775_v7, %v6943_v41  ;;  %v5835_v46 = vsub.f32 %v289_v15, %v5809_v18  ;;  %v1168_v51 = vsub.f32 %v5787_v14, %v1167_v62  ;;  %v175_v18 = vld [vmem:[%s5517_s7 + $0xe0] sm:$0xff] }
  0x3d   : > { %6940 = vst [vmem:[#allocation34_spill] sm:$0xff] %v5822_v37  ;;  %v1162_v44 = vand.u32 4294901760, %v1161_v36  ;;  %v5842_v34 = vsub.f32 %v292_v31, %v5822_v37  ;;  %v5046_v31 = vpack.c.bf16 %v1167_v62, %v1160_v8  ;;  %v176_v37 = vld [vmem:[%s5517_s7 + $0xe8] sm:$0xff]  ;;  %v307_v62 = vsel %vm221_vm0, %v175_v18, 0 }
  0x3e   : > { %4301 = vmatmul.mubr.f32.gmra.mrb[12].mxu1 %v623_v40  ;;  %4649 = vmatmul.mubr.f32.gmra.mrb[12].mxu0 %v6942_v56  ;;  %6944 = vst [vmem:[#allocation36_spill] sm:$0xff] %v5835_v46  ;;  %v301_v40 = vsel %vm221_vm0, %v173_v6, 0  ;;  %v304_v56 = vsel %vm221_vm0, %v174_v53, 0  ;;  %v663_v41 = vand.u32 4294901760, %v662_v4  ;;  %v1169_v15 = vand.u32 4294901760, %v1168_v51 }
  0x3f   : > { %4303 = vmatprep.mubr.f32.mxu1 %v633_v63  ;;  %4651 = vmatprep.mubr.f32.mxu0 %v631_v33  ;;  %6945 = vst [vmem:[#allocation37_spill] sm:$0xff] %v5842_v34  ;;  %v5845_v63 = vsub.f32 %v295_v5, %v5824_v54  ;;  %v5847_v33 = vand.u32 4294901760, %v298_v27  ;;  %v6948_v6 = vand.u32 4294901760, %v5735_v2  ;;  %v6949_v53 = vand.u32 4294901760, %v5800_v1 }
  0x40   : > { %v5855_v0 = vand.u32 4294901760, %v301_v40  ;;  %v5857_v36 = vand.u32 4294901760, %v304_v56  ;;  %v6952_v5 = vand.u32 4294901760, %v5743_v50  ;;  %v673_v51 = vand.u32 4294901760, %v672_v61  ;;  %5047 = vmatprep.subr.bf16.mxu0 %v5046_v31 }
  0x41   : > { %6946 = vst [vmem:[#allocation38_spill] sm:$0xff] %v5845_v63  ;;  %6947 = vst [vmem:[#allocation39_spill] sm:$0xff] %v5847_v33  ;;  %v682_v4 = vsub.f32 %v5800_v1, %v6949_v53  ;;  %v711_v2 = vand.u32 4294901760, %v5835_v46  ;;  %v4986_v54 = vpack.c.bf16 %v1169_v15, %v1162_v44  ;;  %v6954_v53 = vand.u32 4294901760, %v5817_v20  ;;  %5049 = vmatpush3.bf16.msra.mxu0 %v5046_v31  ;;  %v177_v15 = vld [vmem:[%s5517_s7 + $0xf0] sm:$0xff] }
  0x42   : > { %4304 = vmatmul.mubr.f32.gmra.mrb[14].mxu1 %v643_v47  ;;  %4652 = vmatmul.mubr.f32.gmra.mrb[14].mxu0 %v6948_v6  ;;  %6950 = vst [vmem:[#allocation40_spill] sm:$0xff] %v5855_v0  ;;  %6951 = vst [vmem:[#allocation41_spill] sm:$0xff] %v5857_v36  ;;  %v6953_v47 = vand.u32 4294901760, %v5805_v22  ;;  %v5873_v61 = vsub.f32 %v298_v27, %v5847_v33  ;;  %v310_v44 = vsel %vm221_vm0, %v176_v37, 0  ;;  %v6959_v27 = vand.u32 4294901760, %v5775_v7 }
  0x43   : > { %4306 = vmatprep.mubr.f32.mxu1 %v653_v32  ;;  %4654 = vmatprep.mubr.f32.mxu0 %v6952_v5  ;;  %v702_v52 = vsub.f32 %v5817_v20, %v6954_v53  ;;  %v6956_v5 = vand.u32 4294901760, %v5757_v21  ;;  %v5880_v18 = vsub.f32 %v301_v40, %v5855_v0  ;;  %v5883_v53 = vsub.f32 %v304_v56, %v5857_v36  ;;  %v179_v32 = vld [vmem:[%s5517_s7 + $0x100] sm:$0xff]  ;;  %v181_v21 = vld [vmem:[%s5517_s7 + $0x110] sm:$0xff]  ;;  %v182_v36 = vld [vmem:[%s5517_s7 + $0x118] sm:$0xff] }
  0x44   : > { %v692_v6 = vsub.f32 %v5805_v22, %v6953_v47  ;;  %6955 = vst [vmem:[#allocation42_spill] sm:$0xff] %v5873_v61  ;;  %4987 = vmatprep.subr.bf16.mxu1 %v4986_v54  ;;  %v683_v47 = vand.u32 4294901760, %v682_v4  ;;  %v712_v37 = vsub.f32 %v5835_v46, %v711_v2  ;;  %v5888_v8 = vand.u32 4294901760, %v307_v62  ;;  %v180_v46 = vld [vmem:[%s5517_s7 + $0x108] sm:$0xff] }
  0x45   : > { %6957 = vst [vmem:[#allocation43_spill] sm:$0xff] %v5880_v18  ;;  %6958 = vst [vmem:[#allocation44_spill] sm:$0xff] %v5883_v53  ;;  %4989 = vmatpush3.bf16.msra.mxu1 %v4986_v54  ;;  %v5892_v4 = vand.u32 4294901760, %v310_v44  ;;  %v313_v40 = vsel %vm221_vm0, %v177_v15, 0  ;;  %v6962_v56 = vand.u32 4294901760, %v5842_v34  ;;  %v6963_v7 = vand.u32 4294901760, %v5845_v63 }
  0x46   : > { %4307 = vmatmul.mubr.f32.gmra.mrb[16].mxu1 %v663_v41  ;;  %4655 = vmatmul.mubr.f32.gmra.mrb[16].mxu0 %v6956_v5  ;;  %v693_v31 = vand.u32 4294901760, %v692_v6  ;;  %6960 = vst [vmem:[#allocation45_spill] sm:$0xff] %v5888_v8  ;;  %v178_v41 = vld [vmem:[%s5517_s7 + $0xf8] sm:$0xff]  ;;  %v703_v5 = vand.u32 4294901760, %v702_v52  ;;  %v6964_v54 = vand.u32 4294901760, %v5800_v1  ;;  %v6965_v50 = vand.u32 4294901760, %v5805_v22 }
  0x47   : > { %4309 = vmatprep.mubr.f32.mxu1 %v673_v51  ;;  %4657 = vmatprep.mubr.f32.mxu0 %v6959_v27  ;;  %6961 = vst [vmem:[#allocation46_spill] sm:$0xff] %v5892_v4  ;;  %v722_v51 = vsub.f32 %v5842_v34, %v6962_v56  ;;  %v732_v6 = vsub.f32 %v5845_v63, %v6963_v7  ;;  %v316_v15 = vsel %vm221_vm0, %v178_v41, 0  ;;  %v319_v56 = vsel %vm221_vm0, %v179_v32, 0 }
  0x48   : > { %v713_v7 = vand.u32 4294901760, %v712_v37  ;;  %v5912_v27 = vsub.f32 %v307_v62, %v5888_v8  ;;  %v322_v52 = vsel %vm221_vm0, %v180_v46, 0  ;;  %v6969_v41 = vand.u32 4294901760, %v5462_v10 }
  0x49   : > { %v5929_v62 = vand.u32 4294901760, %v316_v15  ;;  %v5931_v37 = vand.u32 4294901760, %v319_v56  ;;  %v6973_v22 = vand.u32 4294901760, %v5467_v11  ;;  %v6974_v46 = vand.u32 4294901760, %v5817_v20 }
  0x4a   : > { %4310 = vmatmul.mubr.f32.gmra.mrb[18].mxu1 %v683_v47  ;;  %4658 = vmatmul.mubr.f32.gmra.mrb[18].mxu0 %v6964_v54  ;;  %6966 = vst [vmem:[#allocation47_spill] sm:$0xff] %v5912_v27  ;;  %v5914_v47 = vand.u32 4294901760, %v313_v40  ;;  %v5917_v54 = vsub.f32 %v310_v44, %v5892_v4  ;;  %v5924_v32 = vsub.f32 %v5462_v10, %v6969_v41  ;;  %v723_v1 = vand.u32 4294901760, %v722_v51 }
  0x4b   : > { %4312 = vmatprep.mubr.f32.mxu1 %v693_v31  ;;  %4660 = vmatprep.mubr.f32.mxu0 %v6965_v50  ;;  %v6970_v50 = vand.u32 4294901760, %v5873_v61  ;;  %6971 = vst [vmem:[#allocation50_spill] sm:$0xff] %v5929_v62  ;;  %6972 = vst [vmem:[#allocation51_spill] sm:$0xff] %v5931_v37  ;;  %v5936_v44 = vsub.f32 %v5467_v11, %v6973_v22  ;;  %v733_v10 = vand.u32 4294901760, %v732_v6  ;;  %v6975_v41 = vand.u32 4294901760, %v5880_v18  ;;  %v184_v6 = vld [vmem:[%s5517_s7 + $0x128] sm:$0xff] }
  0x4c   : > { %6967 = vst [vmem:[#allocation48_spill] sm:$0xff] %v5914_v47  ;;  %6968 = vst [vmem:[#allocation49_spill] sm:$0xff] %v5917_v54  ;;  %v6976_v4 = vand.u32 4294901760, %v5883_v53  ;;  %v771_v11 = vand.u32 4294901760, %v5912_v27  ;;  %v5949_v22 = vsub.f32 %v313_v40, %v5914_v47  ;;  %v325_v51 = vsel %vm221_vm0, %v181_v21, 0 }
  0x4d   : > { %v742_v31 = vsub.f32 %v5873_v61, %v6970_v50  ;;  %v752_v50 = vsub.f32 %v5880_v18, %v6975_v41  ;;  %v5956_v41 = vsub.f32 %v316_v15, %v5929_v62  ;;  %v6981_v40 = vand.u32 4294901760, %v5842_v34 }
  0x4e   : > { %4313 = vmatmul.mubr.f32.gmra.mrb[20].mxu1 %v703_v5  ;;  %4661 = vmatmul.mubr.f32.gmra.mrb[20].mxu0 %v6974_v46  ;;  %v762_v8 = vsub.f32 %v5883_v53, %v6976_v4  ;;  %6977 = vst [vmem:[#allocation52_spill] sm:$0xff] %v5949_v22  ;;  %v5951_v5 = vand.u32 4294901760, %v322_v52  ;;  %v5959_v4 = vsub.f32 %v319_v56, %v5931_v37  ;;  %v5965_v21 = vand.u32 4294901760, %v325_v51 }
  0x4f   : > { %4315 = vmatprep.mubr.f32.mxu1 %v713_v7  ;;  %4663 = vmatprep.mubr.f32.mxu0 %v711_v2  ;;  %v743_v46 = vand.u32 4294901760, %v742_v31  ;;  %6979 = vst [vmem:[#allocation54_spill] sm:$0xff] %v5956_v41  ;;  %v328_v2 = vsel %vm221_vm0, %v182_v36, 0  ;;  %v183_v7 = vld [vmem:[%s5517_s7 + $0x120] sm:$0xff]  ;;  %v753_v20 = vand.u32 4294901760, %v752_v50  ;;  %v1174_v15 = vand.u32 4294901760, %v5924_v32 }
  0x50   : > { %6978 = vst [vmem:[#allocation53_spill] sm:$0xff] %v5951_v5  ;;  %6980 = vst [vmem:[#allocation55_spill] sm:$0xff] %v5959_v4  ;;  %v763_v47 = vand.u32 4294901760, %v762_v8  ;;  %v6982_v31 = vand.u32 4294901760, %v5845_v63  ;;  %v772_v56 = vsub.f32 %v5912_v27, %v771_v11  ;;  %v791_v36 = vand.u32 4294901760, %v5949_v22 }
  0x51   : > { %v1181_v8 = vand.u32 4294901760, %v5936_v44  ;;  %v6984_v50 = vand.u32 4294901760, %v5917_v54  ;;  %v5981_v37 = vand.u32 4294901760, %v328_v2  ;;  %v6985_v0 = vand.u32 4294901760, %v5873_v61 }
  0x52   : > { %4316 = vmatmul.mubr.f32.gmra.mrb[22].mxu1 %v723_v1  ;;  %4664 = vmatmul.mubr.f32.gmra.mrb[22].mxu0 %v6981_v40  ;;  %v5974_v1 = vsub.f32 %v322_v52, %v5951_v5  ;;  %v185_v40 = vld [vmem:[%s5517_s7 + $0x130] sm:$0xff]  ;;  %v334_v52 = vsel %vm221_vm0, %v184_v6, 0  ;;  %v186_v5 = vld [vmem:[%s5517_s7 + $0x138] sm:$0xff]  ;;  %v6987_v63 = vand.u32 4294901760, %v5880_v18  ;;  %v773_v6 = vand.u32 4294901760, %v772_v56 }
  0x53   : > { %4318 = vmatprep.mubr.f32.mxu1 %v733_v10  ;;  %4666 = vmatprep.mubr.f32.mxu0 %v6982_v31  ;;  %v782_v34 = vsub.f32 %v5917_v54, %v6984_v50  ;;  %v331_v10 = vsel %vm221_vm0, %v183_v7, 0  ;;  %v1175_v31 = vsub.f32 %v5924_v32, %v1174_v15  ;;  %v1182_v62 = vsub.f32 %v5936_v44, %v1181_v8 }
  0x54   : > { %6983 = vst [vmem:[#allocation56_spill] sm:$0xff] %v5974_v1  ;;  %v5993_v50 = vsub.f32 %v325_v51, %v5965_v21  ;;  %v337_v7 = vsel %vm221_vm0, %v185_v40, 0  ;;  %v5050_v24 = vpack.c.bf16 %v1181_v8, %v1174_v15  ;;  %v792_v27 = vsub.f32 %v5949_v22, %v791_v36  ;;  %v187_v15 = vld [vmem:[%s5517_s7 + $0x140] sm:$0xff] }
  0x55   : > { %v1176_v33 = vand.u32 4294901760, %v1175_v31  ;;  %v5999_v55 = vand.u32 4294901760, %v331_v10  ;;  %v6001_v61 = vand.u32 4294901760, %v334_v52  ;;  %v821_v51 = vand.u32 4294901760, %v5974_v1 }
  0x56   : > { %4319 = vmatmul.mubr.f32.gmra.mrb[24].mxu1 %v743_v46  ;;  %4667 = vmatmul.mubr.f32.gmra.mrb[24].mxu0 %v6985_v0  ;;  %6986 = vst [vmem:[#allocation57_spill] sm:$0xff] %v5993_v50  ;;  %v1183_v46 = vand.u32 4294901760, %v1182_v62  ;;  %v340_v0 = vsel %vm221_vm0, %v186_v5, 0  ;;  %v6006_v40 = vsub.f32 %v328_v2, %v5981_v37  ;;  %v6992_v62 = vand.u32 4294901760, %v5883_v53 }
  0x57   : > { %4321 = vmatprep.mubr.f32.mxu1 %v753_v20  ;;  %4669 = vmatprep.mubr.f32.mxu0 %v6987_v63  ;;  %6988 = vst [vmem:[#allocation58_spill] sm:$0xff] %v5999_v55  ;;  %6989 = vst [vmem:[#allocation59_spill] sm:$0xff] %v6001_v61  ;;  %v6008_v20 = vand.u32 4294901760, %v337_v7  ;;  %v783_v56 = vand.u32 4294901760, %v782_v34  ;;  %v6993_v5 = vand.u32 4294901760, %v5956_v41  ;;  %v6994_v31 = vand.u32 4294901760, %v5959_v4 }
  0x58   : > { %5051 = vmatprep.subr.bf16.mxu0 %v5050_v24  ;;  %6990 = vst [vmem:[#allocation60_spill] sm:$0xff] %v6006_v40  ;;  %v4990_v63 = vpack.c.bf16 %v1183_v46, %v1176_v33  ;;  %v831_v22 = vand.u32 4294901760, %v5993_v50  ;;  %v6021_v33 = vsub.f32 %v331_v10, %v5999_v55  ;;  %v188_v46 = vld [vmem:[%s5517_s7 + $0x148] sm:$0xff]  ;;  %v6027_v34 = vsub.f32 %v334_v52, %v6001_v61  ;;  %v198_v55 = vld [vmem:[%s5517_s7 + $0x198] sm:$0xff] }
  0x59   : > { %6991 = vst [vmem:[#allocation61_spill] sm:$0xff] %v6008_v20  ;;  %5053 = vmatpush3.bf16.msra.mxu0 %v5050_v24  ;;  %v802_v8 = vsub.f32 %v5956_v41, %v6993_v5  ;;  %v812_v2 = vsub.f32 %v5959_v4, %v6994_v31  ;;  %v793_v24 = vand.u32 4294901760, %v792_v27  ;;  %v189_v5 = vld [vmem:[%s5517_s7 + $0x150] sm:$0xff]  ;;  %v822_v31 = vsub.f32 %v5974_v1, %v821_v51 }
  0x5a   : > { %4322 = vmatmul.mubr.f32.gmra.mrb[26].mxu1 %v763_v47  ;;  %4670 = vmatmul.mubr.f32.gmra.mrb[26].mxu0 %v6992_v62  ;;  %6995 = vst [vmem:[#allocation62_spill] sm:$0xff] %v6021_v33  ;;  %v6023_v47 = vand.u32 4294901760, %v340_v0  ;;  %6997 = vst [vmem:[#allocation64_spill] sm:$0xff] %v6027_v34  ;;  %v343_v62 = vsel %vm221_vm0, %v187_v15, 0  ;;  %v841_v53 = vand.u32 4294901760, %v6006_v40  ;;  %v6034_v27 = vsub.f32 %v337_v7, %v6008_v20 }
  0x5b   : > { %4324 = vmatprep.mubr.f32.mxu1 %v773_v6  ;;  %4672 = vmatprep.mubr.f32.mxu0 %v771_v11  ;;  %v6999_v11 = vand.u32 4294901760, %v5917_v54  ;;  %v803_v10 = vand.u32 4294901760, %v802_v8  ;;  %v813_v52 = vand.u32 4294901760, %v812_v2  ;;  %v832_v6 = vsub.f32 %v5993_v50, %v831_v22  ;;  %v190_v8 = vld [vmem:[%s5517_s7 + $0x158] sm:$0xff] }
  0x5c   : > { %6996 = vst [vmem:[#allocation63_spill] sm:$0xff] %v6023_v47  ;;  %4991 = vmatprep.subr.bf16.mxu1 %v4990_v63  ;;  %6998 = vst [vmem:[#allocation65_spill] sm:$0xff] %v6034_v27  ;;  %v346_v15 = vsel %vm221_vm0, %v188_v46, 0  ;;  %v851_v1 = vand.u32 4294901760, %v6021_v33  ;;  %v6042_v7 = vsub.f32 %v340_v0, %v6023_v47  ;;  %v191_v46 = vld [vmem:[%s5517_s7 + $0x160] sm:$0xff]  ;;  %v842_v54 = vsub.f32 %v6006_v40, %v841_v53 }
  0x5d   : > { %4993 = vmatpush3.bf16.msra.mxu1 %v4990_v63  ;;  %v6044_v63 = vand.u32 4294901760, %v343_v62  ;;  %v6050_v50 = vand.u32 4294901760, %v346_v15  ;;  %v833_v0 = vand.u32 4294901760, %v832_v6  ;;  %v7007_v6 = vand.u32 4294901760, %v6027_v34 }
  0x5e   : > { %4325 = vmatmul.mubr.f32.gmra.mrb[28].mxu1 %v783_v56  ;;  %4673 = vmatmul.mubr.f32.gmra.mrb[28].mxu0 %v6999_v11  ;;  %7000 = vst [vmem:[#allocation66_spill] sm:$0xff] %v6042_v7  ;;  %v349_v56 = vsel %vm221_vm0, %v189_v5, 0  ;;  %v192_v5 = vld [vmem:[%s5517_s7 + $0x168] sm:$0xff]  ;;  %v7005_v11 = vand.u32 4294901760, %v5959_v4  ;;  %v852_v2 = vsub.f32 %v6021_v33, %v851_v1  ;;  %v355_v40 = vsel %vm221_vm0, %v191_v46, 0  ;;  %v194_v46 = vld [vmem:[%s5517_s7 + $0x178] sm:$0xff] }
  0x5f   : > { %4327 = vmatprep.mubr.f32.mxu1 %v793_v24  ;;  %4675 = vmatprep.mubr.f32.mxu0 %v791_v36  ;;  %7001 = vst [vmem:[#allocation67_spill] sm:$0xff] %v6044_v63  ;;  %7002 = vst [vmem:[#allocation68_spill] sm:$0xff] %v6050_v50  ;;  %v7003_v36 = vand.u32 4294901760, %v5956_v41  ;;  %v823_v24 = vand.u32 4294901760, %v822_v31  ;;  %v6056_v18 = vand.u32 4294901760, %v349_v56  ;;  %v6064_v41 = vsub.f32 %v343_v62, %v6044_v63  ;;  %v193_v62 = vld [vmem:[%s5517_s7 + $0x170] sm:$0xff] }
  0x60   : > { %v352_v31 = vsel %vm221_vm0, %v190_v8, 0  ;;  %v6075_v4 = vsub.f32 %v346_v15, %v6050_v50  ;;  %v843_v8 = vand.u32 4294901760, %v842_v54  ;;  %v7012_v63 = vand.u32 4294901760, %v5472_v12 }
  0x61   : > { %7004 = vst [vmem:[#allocation69_spill] sm:$0xff] %v6056_v18  ;;  %7006 = vst [vmem:[#allocation70_spill] sm:$0xff] %v6064_v41  ;;  %v6080_v33 = vsub.f32 %v349_v56, %v6056_v18  ;;  %v853_v15 = vand.u32 4294901760, %v852_v2  ;;  %v891_v54 = vand.u32 4294901760, %v6064_v41  ;;  %v195_v56 = vld [vmem:[%s5517_s7 + $0x180] sm:$0xff]  ;;  %v361_v47 = vsel %vm221_vm0, %v193_v62, 0 }
  0x62   : > { %4328 = vmatmul.mubr.f32.gmra.mrb[30].mxu1 %v803_v10  ;;  %4676 = vmatmul.mubr.f32.gmra.mrb[30].mxu0 %v7003_v36  ;;  %v862_v36 = vsub.f32 %v6027_v34, %v7007_v6  ;;  %7009 = vst [vmem:[#allocation71_spill] sm:$0xff] %v6075_v4  ;;  %v358_v10 = vsel %vm221_vm0, %v192_v5, 0  ;;  %v6082_v6 = vand.u32 4294901760, %v352_v31  ;;  %v7013_v5 = vand.u32 4294901760, %v6042_v7 }
  0x63   : > { %4330 = vmatprep.mubr.f32.mxu1 %v813_v52  ;;  %4678 = vmatprep.mubr.f32.mxu0 %v7005_v11  ;;  %v7008_v52 = vand.u32 4294901760, %v6034_v27  ;;  %7010 = vst [vmem:[#allocation72_spill] sm:$0xff] %v6080_v33  ;;  %v6097_v50 = vand.u32 4294901760, %v358_v10  ;;  %v364_v2 = vsel %vm221_vm0, %v194_v46, 0  ;;  %v367_v20 = vsel %vm221_vm0, %v195_v56, 0 }
  0x64   : > { %7011 = vst [vmem:[#allocation73_spill] sm:$0xff] %v6082_v6  ;;  %v863_v18 = vand.u32 4294901760, %v862_v36  ;;  %v6110_v62 = vsub.f32 %v352_v31, %v6082_v6  ;;  %v892_v46 = vsub.f32 %v6064_v41, %v891_v54  ;;  %v6125_v36 = vand.u32 4294901760, %v364_v2 }
  0x65   : > { %v872_v11 = vsub.f32 %v6034_v27, %v7008_v52  ;;  %v6088_v52 = vsub.f32 %v5472_v12, %v7012_v63  ;;  %7015 = vst [vmem:[#allocation75_spill] sm:$0xff] %v6097_v50  ;;  %v6123_v31 = vsub.f32 %v358_v10, %v6097_v50  ;;  %v6127_v56 = vand.u32 4294901760, %v367_v20 }
  0x66   : > { %4331 = vmatmul.mubr.f32.gmra.mrb[32].mxu1 %v823_v24  ;;  %4679 = vmatmul.mubr.f32.gmra.mrb[32].mxu0 %v821_v51  ;;  %v882_v24 = vsub.f32 %v6042_v7, %v7013_v5  ;;  %v6094_v51 = vand.u32 4294901760, %v355_v40  ;;  %7017 = vst [vmem:[#allocation76_spill] sm:$0xff] %v6110_v62  ;;  %v7023_v6 = vand.u32 4294901760, %v6075_v4  ;;  %v7024_v10 = vand.u32 4294901760, %v6080_v33 }
  0x67   : > { %4333 = vmatprep.mubr.f32.mxu1 %v833_v0  ;;  %4681 = vmatprep.mubr.f32.mxu0 %v831_v22  ;;  %v1188_v12 = vand.u32 4294901760, %v6088_v52  ;;  %v873_v63 = vand.u32 4294901760, %v872_v11  ;;  %v7016_v0 = vand.u32 4294901760, %v5481_v16  ;;  %7020 = vst [vmem:[#allocation79_spill] sm:$0xff] %v6123_v31  ;;  %7021 = vst [vmem:[#allocation80_spill] sm:$0xff] %v6127_v56  ;;  %v921_v61 = vand.u32 4294901760, %v6110_v62 }
  0x68   : > { %7014 = vst [vmem:[#allocation74_spill] sm:$0xff] %v6094_v51  ;;  %v6116_v22 = vsub.f32 %v355_v40, %v6094_v51  ;;  %v7022_v51 = vand.u32 4294901760, %v6027_v34  ;;  %v912_v50 = vsub.f32 %v6080_v33, %v7024_v10 }
  0x69   : > { %v6106_v5 = vsub.f32 %v5481_v16, %v7016_v0  ;;  %v1189_v11 = vsub.f32 %v6088_v52, %v1188_v12  ;;  %v6118_v16 = vand.u32 4294901760, %v361_v47  ;;  %v883_v0 = vand.u32 4294901760, %v882_v24 }
  0x6a   : > { %4334 = vmatmul.mubr.f32.gmra.mrb[34].mxu1 %v843_v8  ;;  %4682 = vmatmul.mubr.f32.gmra.mrb[34].mxu0 %v841_v53  ;;  %7018 = vst [vmem:[#allocation77_spill] sm:$0xff] %v6116_v22  ;;  %v196_v53 = vld [vmem:[%s5517_s7 + $0x188] sm:$0xff]  ;;  %v902_v24 = vsub.f32 %v6075_v4, %v7023_v6 }
  0x6b   : > { %4336 = vmatprep.mubr.f32.mxu1 %v853_v15  ;;  %4684 = vmatprep.mubr.f32.mxu0 %v851_v1  ;;  %7019 = vst [vmem:[#allocation78_spill] sm:$0xff] %v6118_v16  ;;  %v1195_v8 = vand.u32 4294901760, %v6106_v5  ;;  %v197_v15 = vld [vmem:[%s5517_s7 + $0x190] sm:$0xff]  ;;  %v1190_v1 = vand.u32 4294901760, %v1189_v11  ;;  %v370_v11 = vsel %vm221_vm0, %v196_v53, 0  ;;  %v6151_v53 = vsub.f32 %v364_v2, %v6125_v36 }
  0x6c   : > { %v373_v10 = vsel %vm221_vm0, %v197_v15, 0  ;;  %v903_v34 = vand.u32 4294901760, %v902_v24  ;;  %v913_v15 = vand.u32 4294901760, %v912_v50 }
  0x6d   : > { %v1196_v41 = vsub.f32 %v6106_v5, %v1195_v8  ;;  %v5054_v40 = vpack.c.bf16 %v1195_v8, %v1188_v12  ;;  %v7025_v12 = vand.u32 4294901760, %v6034_v27  ;;  %v6145_v8 = vsub.f32 %v361_v47, %v6118_v16  ;;  %7027 = vst [vmem:[#allocation82_spill] sm:$0xff] %v6151_v53  ;;  %v200_v16 = vld [vmem:[%s5517_s7 + $0x1a8] sm:$0xff] }
  0x6e   : > { %4337 = vmatmul.mubr.f32.gmra.mrb[36].mxu1 %v863_v18  ;;  %4685 = vmatmul.mubr.f32.gmra.mrb[36].mxu0 %v7022_v51  ;;  %v893_v18 = vand.u32 4294901760, %v892_v46  ;;  %v931_v51 = vand.u32 4294901760, %v6116_v22  ;;  %v6156_v46 = vand.u32 4294901760, %v370_v11  ;;  %v922_v27 = vsub.f32 %v6110_v62, %v921_v61 }
  0x6f   : > { %4339 = vmatprep.mubr.f32.mxu1 %v873_v63  ;;  %4687 = vmatprep.mubr.f32.mxu0 %v7025_v12  ;;  %7026 = vst [vmem:[#allocation81_spill] sm:$0xff] %v6145_v8  ;;  %v1197_v6 = vand.u32 4294901760, %v1196_v41  ;;  %v6154_v63 = vsub.f32 %v367_v20, %v6127_v56  ;;  %v199_v12 = vld [vmem:[%s5517_s7 + $0x1a0] sm:$0xff]  ;;  %v7029_v41 = vand.u32 4294901760, %v6042_v7  ;;  %v951_v2 = vand.u32 4294901760, %v6145_v8 }
  0x70   : > { %5055 = vmatprep.subr.bf16.mxu0 %v5054_v40  ;;  %v932_v20 = vsub.f32 %v6116_v22, %v931_v51  ;;  %v6165_v56 = vand.u32 4294901760, %v373_v10  ;;  %v379_v50 = vsel %vm221_vm0, %v199_v12, 0  ;;  %v923_v12 = vand.u32 4294901760, %v922_v27 }
  0x71   : > { %7028 = vst [vmem:[#allocation83_spill] sm:$0xff] %v6154_v63  ;;  %v4994_v47 = vpack.c.bf16 %v1197_v6, %v1190_v1  ;;  %5057 = vmatpush3.bf16.msra.mxu0 %v5054_v40  ;;  %v376_v1 = vsel %vm221_vm0, %v198_v55, 0  ;;  %v201_v40 = vld [vmem:[%s5517_s7 + $0x1b0] sm:$0xff]  ;;  %v382_v55 = vsel %vm221_vm0, %v200_v16, 0  ;;  %v7034_v62 = vand.u32 4294901760, %v6080_v33 }
  0x72   : > { %4340 = vmatmul.mubr.f32.gmra.mrb[38].mxu1 %v883_v0  ;;  %4688 = vmatmul.mubr.f32.gmra.mrb[38].mxu0 %v7029_v41  ;;  %7030 = vst [vmem:[#allocation84_spill] sm:$0xff] %v6165_v56  ;;  %v7031_v0 = vand.u32 4294901760, %v6123_v31  ;;  %v7033_v41 = vand.u32 4294901760, %v6075_v4  ;;  %v385_v22 = vsel %vm221_vm0, %v201_v40, 0  ;;  %v933_v24 = vand.u32 4294901760, %v932_v20 }
  0x73   : > { %4342 = vmatprep.mubr.f32.mxu1 %v893_v18  ;;  %4690 = vmatprep.mubr.f32.mxu0 %v891_v54  ;;  %v961_v54 = vand.u32 4294901760, %v6151_v53  ;;  %v6177_v18 = vsub.f32 %v370_v11, %v6156_v46  ;;  %v952_v11 = vsub.f32 %v6145_v8, %v951_v2  ;;  %v6189_v7 = vsub.f32 %v373_v10, %v6165_v56 }
  0x74   : > { %v942_v6 = vsub.f32 %v6123_v31, %v7031_v0  ;;  %4995 = vmatprep.subr.bf16.mxu1 %v4994_v47  ;;  %5059 = vmatprep.subr.bf16.mxu0 %v5474_v13  ;;  %v6182_v0 = vand.u32 4294901760, %v376_v1  ;;  %v6191_v16 = vand.u32 4294901760, %v379_v50  ;;  %v6195_v27 = vand.u32 4294901760, %v382_v55 }
  0x75   : > { %7032 = vst [vmem:[#allocation85_spill] sm:$0xff] %v6177_v18  ;;  %4997 = vmatpush3.bf16.msra.mxu1 %v4994_v47  ;;  %7035 = vst [vmem:[#allocation86_spill] sm:$0xff] %v6189_v7  ;;  %v203_v47 = vld [vmem:[%s5517_s7 + $0x1c0] sm:$0xff]  ;;  %v962_v4 = vsub.f32 %v6151_v53, %v961_v54  ;;  %v981_v20 = vand.u32 4294901760, %v6177_v18  ;;  %v6202_v40 = vand.u32 4294901760, %v385_v22  ;;  %v6211_v53 = vpack.c.bf16 %v5495_v23, %v5486_v19 }
  0x76   : > { %4343 = vmatmul.mubr.f32.gmra.mrb[40].mxu1 %v903_v34  ;;  %4691 = vmatmul.mubr.f32.gmra.mrb[40].mxu0 %v7033_v41  ;;  %v202_v34 = vld [vmem:[%s5517_s7 + $0x1b8] sm:$0xff]  ;;  %v943_v41 = vand.u32 4294901760, %v942_v6  ;;  %7036 = vst [vmem:[#allocation87_spill] sm:$0xff] %v6195_v27  ;;  %v6205_v10 = vsub.f32 %v376_v1, %v6182_v0  ;;  %v391_v8 = vsel %vm221_vm0, %v203_v47, 0  ;;  %v991_v33 = vand.u32 4294901760, %v6189_v7  ;;  %v204_v1 = vld [vmem:[%s5517_s7 + $0x1c8] sm:$0xff] }
  0x77   : > { %4345 = vmatprep.mubr.f32.mxu1 %v913_v15  ;;  %4693 = vmatprep.mubr.f32.mxu0 %v7034_v62  ;;  %v7037_v15 = vand.u32 4294901760, %v6154_v63  ;;  %7038 = vst [vmem:[#allocation88_spill] sm:$0xff] %v6202_v40  ;;  %v388_v6 = vsel %vm221_vm0, %v202_v34, 0  ;;  %v6215_v56 = vsub.f32 %v379_v50, %v6191_v16  ;;  %v6224_v34 = vsub.f32 %v385_v22, %v6202_v40 }
  0x78   : > { %7039 = vst [vmem:[#allocation89_spill] sm:$0xff] %v6205_v10  ;;  %4999 = vmatprep.subr.bf16.mxu1 %v6211_v53  ;;  %v6226_v19 = vand.u32 4294901760, %v388_v6  ;;  %v6228_v23 = vand.u32 4294901760, %v391_v8  ;;  %v7045_v50 = vand.u32 4294901760, %v6123_v31  ;;  %v1001_v22 = vand.u32 4294901760, %v6205_v10 }
  0x79   : > { %v972_v62 = vsub.f32 %v6154_v63, %v7037_v15  ;;  %v953_v15 = vand.u32 4294901760, %v952_v11  ;;  %7040 = vst [vmem:[#allocation90_spill] sm:$0xff] %v6215_v56  ;;  %7042 = vst [vmem:[#allocation92_spill] sm:$0xff] %v6224_v34  ;;  %v982_v11 = vsub.f32 %v6177_v18, %v981_v20  ;;  %v992_v47 = vsub.f32 %v6189_v7, %v991_v33 }
  0x7a   : > { %4346 = vmatmul.mubr.f32.gmra.mrb[42].mxu1 %v923_v12  ;;  %4694 = vmatmul.mubr.f32.gmra.mrb[42].mxu0 %v921_v61  ;;  %v6218_v61 = vsub.f32 %v382_v55, %v6195_v27  ;;  %v205_v12 = vld [vmem:[%s5517_s7 + $0x1d0] sm:$0xff]  ;;  %7043 = vst [vmem:[#allocation93_spill] sm:$0xff] %v6226_v19  ;;  %7044 = vst [vmem:[#allocation94_spill] sm:$0xff] %v6228_v23  ;;  %v1011_v40 = vand.u32 4294901760, %v6215_v56  ;;  %v7050_v31 = vand.u32 4294901760, %v6154_v63 }
  0x7b   : > { %4348 = vmatprep.mubr.f32.mxu1 %v933_v24  ;;  %4696 = vmatprep.mubr.f32.mxu0 %v931_v51  ;;  %v6232_v51 = vpack.c.bf16 %v5936_v44, %v5924_v32  ;;  %v963_v24 = vand.u32 4294901760, %v962_v4  ;;  %v973_v55 = vand.u32 4294901760, %v972_v62  ;;  %v394_v32 = vsel %vm221_vm0, %v204_v1, 0  ;;  %v209_v27 = vld [vmem:[%s5517_s7 + $0x1f0] sm:$0xff] }
  0x7c   : > { %7041 = vst [vmem:[#allocation91_spill] sm:$0xff] %v6218_v61  ;;  %v397_v44 = vsel %vm221_vm0, %v205_v12, 0  ;;  %v1031_v4 = vand.u32 4294901760, %v6224_v34  ;;  %v6246_v62 = vsub.f32 %v388_v6, %v6226_v19  ;;  %v983_v7 = vand.u32 4294901760, %v982_v11 }
  0x7d   : > { %v1002_v1 = vsub.f32 %v6205_v10, %v1001_v22  ;;  %v6253_v12 = vand.u32 4294901760, %v394_v32  ;;  %v6255_v18 = vand.u32 4294901760, %v397_v44  ;;  %v993_v6 = vand.u32 4294901760, %v992_v47 }
  0x7e   : > { %4349 = vmatmul.mubr.f32.gmra.mrb[44].mxu1 %v943_v41  ;;  %4697 = vmatmul.mubr.f32.gmra.mrb[44].mxu0 %v7045_v50  ;;  %v206_v41 = vld [vmem:[%s5517_s7 + $0x1d8] sm:$0xff]  ;;  %v1021_v50 = vand.u32 4294901760, %v6218_v61  ;;  %7046 = vst [vmem:[#allocation95_spill] sm:$0xff] %v6246_v62  ;;  %v1012_v19 = vsub.f32 %v6215_v56, %v1011_v40  ;;  %v1032_v10 = vsub.f32 %v6224_v34, %v1031_v4  ;;  %v409_v63 = vsel %vm221_vm0, %v209_v27, 0 }
  0x7f   : > { %4351 = vmatprep.mubr.f32.mxu1 %v953_v15  ;;  %4699 = vmatprep.mubr.f32.mxu0 %v951_v2  ;;  %v6249_v15 = vsub.f32 %v391_v8, %v6228_v23  ;;  %v207_v2 = vld [vmem:[%s5517_s7 + $0x1e0] sm:$0xff]  ;;  %7048 = vst [vmem:[#allocation97_spill] sm:$0xff] %v6253_v12  ;;  %7049 = vst [vmem:[#allocation98_spill] sm:$0xff] %v6255_v18  ;;  %v400_v8 = vsel %vm221_vm0, %v206_v41, 0  ;;  %v1041_v23 = vand.u32 4294901760, %v6246_v62 }
  0x80   : > { %v1022_v11 = vsub.f32 %v6218_v61, %v1021_v50  ;;  %v6269_v47 = vsub.f32 %v394_v32, %v6253_v12  ;;  %v6272_v41 = vsub.f32 %v397_v44, %v6255_v18  ;;  %v1013_v34 = vand.u32 4294901760, %v1012_v19 }
  0x81   : > { %7047 = vst [vmem:[#allocation96_spill] sm:$0xff] %v6249_v15  ;;  %v1042_v32 = vsub.f32 %v6246_v62, %v1041_v23 }
  0x82   : > { %4352 = vmatmul.mubr.f32.gmra.mrb[46].mxu1 %v963_v24  ;;  %4700 = vmatmul.mubr.f32.gmra.mrb[46].mxu0 %v961_v54  ;;  %v403_v24 = vsel %vm221_vm0, %v207_v2, 0  ;;  %v208_v54 = vld [vmem:[%s5517_s7 + $0x1e8] sm:$0xff]  ;;  %7051 = vst [vmem:[#allocation99_spill] sm:$0xff] %v6269_v47  ;;  %7052 = vst [vmem:[#allocation100_spill] sm:$0xff] %v6272_v41  ;;  %v6274_v2 = vand.u32 4294901760, %v400_v8  ;;  %v1061_v44 = vand.u32 4294901760, %v6269_v47 }
  0x83   : > { %4354 = vmatprep.mubr.f32.mxu1 %v973_v55  ;;  %4702 = vmatprep.mubr.f32.mxu0 %v7050_v31  ;;  %v1051_v55 = vand.u32 4294901760, %v6249_v15  ;;  %v1003_v31 = vand.u32 4294901760, %v1002_v1  ;;  %v6276_v61 = vand.u32 4294901760, %v403_v24  ;;  %v406_v56 = vsel %vm221_vm0, %v208_v54, 0 }
  0x84   : > { %7053 = vst [vmem:[#allocation101_spill] sm:$0xff] %v6274_v2  ;;  %v1033_v1 = vand.u32 4294901760, %v1032_v10  ;;  %v6286_v19 = vsub.f32 %v400_v8, %v6274_v2  ;;  %v6293_v10 = vand.u32 4294901760, %v409_v63  ;;  %v1062_v8 = vsub.f32 %v6269_v47, %v1061_v44  ;;  %v7099_v47 = vld [vmem:[#allocation93_spill] sm:$0xff] }
  0x85   : > { %7054 = vst [vmem:[#allocation102_spill] sm:$0xff] %v6276_v61  ;;  %v1052_v12 = vsub.f32 %v6249_v15, %v1051_v55  ;;  %v6291_v27 = vsub.f32 %v403_v24, %v6276_v61  ;;  %v7100_v15 = vld [vmem:[#allocation94_spill] sm:$0xff] }
  0x86   : > { %4355 = vmatmul.mubr.f32.gmra.mrb[48].mxu1 %v983_v7  ;;  %4703 = vmatmul.mubr.f32.gmra.mrb[48].mxu0 %v981_v20  ;;  %v210_v7 = vld [vmem:[%s5517_s7 + $0x1f8] sm:$0xff]  ;;  %v1023_v20 = vand.u32 4294901760, %v1022_v11  ;;  %7055 = vst [vmem:[#allocation103_spill] sm:$0xff] %v6286_v19  ;;  %7058 = vst [vmem:[#allocation106_spill] sm:$0xff] %v6293_v10  ;;  %v1043_v11 = vand.u32 4294901760, %v1042_v32 }
  0x87   : > { %4357 = vmatprep.mubr.f32.mxu1 %v993_v6  ;;  %4705 = vmatprep.mubr.f32.mxu0 %v991_v33  ;;  %v1071_v33 = vand.u32 4294901760, %v6272_v41  ;;  %v6288_v6 = vand.u32 4294901760, %v406_v56  ;;  %7057 = vst [vmem:[#allocation105_spill] sm:$0xff] %v6291_v27  ;;  %v412_v54 = vsel %vm221_vm0, %v210_v7, 0  ;;  %v1053_v24 = vand.u32 4294901760, %v1052_v12  ;;  %v7101_v62 = vld [vmem:[#allocation97_spill] sm:$0xff] }
  0x89   : > { %7056 = vst [vmem:[#allocation104_spill] sm:$0xff] %v6288_v6  ;;  %v1072_v7 = vsub.f32 %v6272_v41, %v1071_v33  ;;  %v7098_v41 = vld [vmem:[#allocation88_spill] sm:$0xff] }
  0x8a   : > { %4358 = vmatmul.mubr.f32.gmra.mrb[50].mxu1 %v1003_v31  ;;  %4706 = vmatmul.mubr.f32.gmra.mrb[50].mxu0 %v1001_v22  ;;  %v6298_v22 = vpack.c.bf16 %v6106_v5, %v6088_v52  ;;  %v1081_v31 = vand.u32 4294901760, %v6286_v19  ;;  %v1091_v52 = vand.u32 4294901760, %v6291_v27  ;;  %v6310_v5 = vsub.f32 %v409_v63, %v6293_v10 }
  0x8b   : > { %4360 = vmatprep.mubr.f32.mxu1 %v1013_v34  ;;  %4708 = vmatprep.mubr.f32.mxu0 %v1011_v40  ;;  %v6303_v40 = vsub.f32 %v406_v56, %v6288_v6  ;;  %v6305_v34 = vand.u32 4294901760, %v412_v54 }
  0x8c   : > { %7061 = vst [vmem:[#allocation109_spill] sm:$0xff] %v6310_v5  ;;  %v1092_v12 = vsub.f32 %v6291_v27, %v1091_v52  ;;  %v7096_v27 = vld [vmem:[#allocation84_spill] sm:$0xff] }
  0x8d   : > { %7059 = vst [vmem:[#allocation107_spill] sm:$0xff] %v6303_v40  ;;  %7060 = vst [vmem:[#allocation108_spill] sm:$0xff] %v6305_v34  ;;  %v1101_v56 = vand.u32 4294901760, %v6303_v40  ;;  %v6315_v32 = vsub.f32 %v412_v54, %v6305_v34 }
  0x8e   : > { %4361 = vmatmul.mubr.f32.gmra.mrb[52].mxu1 %v1023_v20  ;;  %4709 = vmatmul.mubr.f32.gmra.mrb[52].mxu0 %v1021_v50  ;;  %v1063_v50 = vand.u32 4294901760, %v1062_v8  ;;  %v1082_v20 = vsub.f32 %v6286_v19, %v1081_v31  ;;  %v1093_v8 = vand.u32 4294901760, %v1092_v12  ;;  %v7080_v12 = vld [vmem:[#allocation48_spill] sm:$0xff]  ;;  %v7097_v19 = vld [vmem:[#allocation87_spill] sm:$0xff] }
  0x8f   : > { %4363 = vmatprep.mubr.f32.mxu1 %v1033_v1  ;;  %4711 = vmatprep.mubr.f32.mxu0 %v1031_v4  ;;  %7062 = vst [vmem:[#allocation110_spill] sm:$0xff] %v6315_v32  ;;  %v1073_v4 = vand.u32 4294901760, %v1072_v7  ;;  %v1111_v1 = vand.u32 4294901760, %v6310_v5 }
  0x90   : > { %v1083_v63 = vand.u32 4294901760, %v1082_v20  ;;  %v7077_v20 = vld [vmem:[#allocation41_spill] sm:$0xff] }
  0x91   : > { %v1112_v54 = vsub.f32 %v6310_v5, %v1111_v1  ;;  %v7094_v5 = vld [vmem:[#allocation78_spill] sm:$0xff] }
  0x92   : > { %4364 = vmatmul.mubr.f32.gmra.mrb[54].mxu1 %v1043_v11  ;;  %4712 = vmatmul.mubr.f32.gmra.mrb[54].mxu0 %v1041_v23  ;;  %v1102_v23 = vsub.f32 %v6303_v40, %v1101_v56  ;;  %v1121_v11 = vand.u32 4294901760, %v6315_v32  ;;  %v7095_v40 = vld [vmem:[#allocation80_spill] sm:$0xff] }
  0x93   : > { %4366 = vmatprep.mubr.f32.mxu1 %v1053_v24  ;;  %4714 = vmatprep.mubr.f32.mxu0 %v1051_v55  ;;  %v1113_v7 = vand.u32 4294901760, %v1112_v54  ;;  %v7086_v54 = vld [vmem:[#allocation61_spill] sm:$0xff] }
  0x94   : > { %v1103_v55 = vand.u32 4294901760, %v1102_v23  ;;  %v1122_v24 = vsub.f32 %v6315_v32, %v1121_v11  ;;  %v7083_v23 = vld [vmem:[#allocation53_spill] sm:$0xff]  ;;  %v7093_v32 = vld [vmem:[#allocation75_spill] sm:$0xff] }
  0x96   : > { %4367 = vmatmul.mubr.f32.gmra.mrb[56].mxu1 %v1063_v50  ;;  %4715 = vmatmul.mubr.f32.gmra.mrb[56].mxu0 %v1061_v44  ;;  %v1123_v44 = vand.u32 4294901760, %v1122_v24  ;;  %v7076_v50 = vld [vmem:[#allocation40_spill] sm:$0xff]  ;;  %v7088_v24 = vld [vmem:[#allocation67_spill] sm:$0xff] }
  0x97   : > { %4369 = vmatprep.mubr.f32.mxu1 %v1073_v4  ;;  %4717 = vmatprep.mubr.f32.mxu0 %v1071_v33  ;;  %v5002_v33 = vpack.c.bf16 %v5542_v35, %v5500_v25  ;;  %v7066_v25 = vld [vmem:[#allocation20_spill] sm:$0xff]  ;;  %v7079_v4 = vld [vmem:[#allocation46_spill] sm:$0xff] }
  0x98   : > { %v7070_v35 = vld [vmem:[#allocation28_spill] sm:$0xff] }
  0x9a   : > { %4370 = vmatmul.mubr.f32.gmra.mrb[58].mxu1 %v1083_v63  ;;  %4718 = vmatmul.mubr.f32.gmra.mrb[58].mxu0 %v1081_v31  ;;  %v5006_v31 = vpack.c.bf16 %v5787_v14, %v5762_v3  ;;  %v7064_v14 = vld [vmem:[#allocation16_spill] sm:$0xff]  ;;  %v7071_v3 = vld [vmem:[#allocation29_spill] sm:$0xff]  ;;  %v7082_v63 = vld [vmem:[#allocation51_spill] sm:$0xff] }
  0x9b   : > { %4372 = vmatprep.mubr.f32.mxu1 %v1093_v8  ;;  %4720 = vmatprep.mubr.f32.mxu0 %v1091_v52  ;;  %v7075_v52 = vld [vmem:[#allocation39_spill] sm:$0xff] }
  0x9c   : > { %v7085_v8 = vld [vmem:[#allocation59_spill] sm:$0xff] }
  0x9e   : > { %4373 = vmatmul.mubr.f32.gmra.mrb[60].mxu1 %v1103_v55  ;;  %4721 = vmatmul.mubr.f32.gmra.mrb[60].mxu0 %v1101_v56  ;;  %v7078_v56 = vld [vmem:[#allocation45_spill] sm:$0xff]  ;;  %v7087_v55 = vld [vmem:[#allocation63_spill] sm:$0xff] }
  0x9f   : > { %4375 = vmatprep.mubr.f32.mxu1 %v1113_v7  ;;  %4723 = vmatprep.mubr.f32.mxu0 %v1111_v1  ;;  %v7081_v1 = vld [vmem:[#allocation50_spill] sm:$0xff]  ;;  %v7089_v7 = vld [vmem:[#allocation68_spill] sm:$0xff] }
  0xa2   : > { %4376 = vmatmul.mubr.f32.gmra.mrb[62].mxu1 %v1123_v44  ;;  %4724 = vmatmul.mubr.f32.gmra.mrb[62].mxu0 %v1121_v11  ;;  %v7084_v11 = vld [vmem:[#allocation58_spill] sm:$0xff]  ;;  %v7090_v44 = vld [vmem:[#allocation69_spill] sm:$0xff] }
  0xa3   : > { %4398 = vmatprep.mubr.f32.mxu1 %v5554_v42  ;;  %4746 = vmatprep.mubr.f32.mxu0 %v5554_v42 }
  0xa6   : > { %4399 = vmatmul.mubr.f32.vlgmr.msra.gmra.mrb[0].mxu1 %v5556_v43  ;;  %4747 = vmatmul.mubr.f32.vlgmr.msra.gmra.mrb[0].mxu0 %v5556_v43 }
  0xa7   : > { %5001 = vmatpush3.bf16.msra.mxu1 %v6211_v53  ;;  %5061 = vmatpush3.bf16.msra.mxu0 %v5474_v13  ;;  %v7063_v13 = vld [vmem:[#allocation13_spill] sm:$0xff]  ;;  %v7072_v53 = vld [vmem:[#allocation32_spill] sm:$0xff] }
  0xa8   : > { %4401 = vmatprep.mubr.f32.mxu1 %v5559_v45  ;;  %4749 = vmatprep.mubr.f32.mxu0 %v5559_v45 }
  0xa9   : > { %5003 = vmatprep.subr.bf16.mxu1 %v5002_v33  ;;  %5063 = vmatprep.subr.bf16.mxu0 %v5483_v17 }
  0xaa   : > { %4402 = vmatmul.mubr.f32.gmra.mrb[2].mxu1 %v5579_v57  ;;  %4750 = vmatmul.mubr.f32.gmra.mrb[2].mxu0 %v5579_v57 }
  0xab   : > { %4404 = vmatprep.mubr.f32.mxu1 %v5581_v58  ;;  %4752 = vmatprep.mubr.f32.mxu0 %v5581_v58 }
  0xac   : > { %5005 = vmatpush3.bf16.msra.mxu1 %v5002_v33  ;;  %5065 = vmatpush3.bf16.msra.mxu0 %v5483_v17  ;;  %v7065_v17 = vld [vmem:[#allocation18_spill] sm:$0xff]  ;;  %v7091_v33 = vld [vmem:[#allocation73_spill] sm:$0xff] }
  0xad   : > { %5007 = vmatprep.subr.bf16.mxu1 %v5006_v31  ;;  %5067 = vmatprep.subr.bf16.mxu0 %v5508_v26 }
  0xae   : > { %4405 = vmatmul.mubr.f32.gmra.mrb[4].mxu1 %v5583_v59  ;;  %4753 = vmatmul.mubr.f32.gmra.mrb[4].mxu0 %v5583_v59 }
  0xaf   : > { %4407 = vmatprep.mubr.f32.mxu1 %v5585_v60  ;;  %4755 = vmatprep.mubr.f32.mxu0 %v5585_v60 }
  0xb0   : > { %5009 = vmatpush3.bf16.msra.mxu1 %v5006_v31  ;;  %5069 = vmatpush3.bf16.msra.mxu0 %v5508_v26  ;;  %v7067_v26 = vld [vmem:[#allocation22_spill] sm:$0xff] }
  0xb1   : > { %5011 = vmatprep.subr.bf16.mxu1 %v6232_v51  ;;  %5071 = vmatprep.subr.bf16.mxu0 %v5528_v29  ;;  %v7092_v31 = vld [vmem:[#allocation74_spill] sm:$0xff] }
  0xb2   : > { %4408 = vmatmul.mubr.f32.gmra.mrb[6].mxu1 %v5610_v28  ;;  %4756 = vmatmul.mubr.f32.gmra.mrb[6].mxu0 %v5610_v28 }
  0xb3   : > { %4410 = vmatprep.mubr.f32.mxu1 %v5655_v38  ;;  %4758 = vmatprep.mubr.f32.mxu0 %v5655_v38 }
  0xb4   : > { %5013 = vmatpush3.bf16.msra.mxu1 %v6232_v51  ;;  %5073 = vmatpush3.bf16.msra.mxu0 %v5528_v29  ;;  %v7068_v29 = vld [vmem:[#allocation24_spill] sm:$0xff]  ;;  %v7073_v51 = vld [vmem:[#allocation34_spill] sm:$0xff] }
  0xb5   : > { %5015 = vmatprep.subr.bf16.mxu1 %v6298_v22  ;;  %5075 = vmatprep.subr.bf16.mxu0 %v5534_v30 }
  0xb6   : > { %4411 = vmatmul.mubr.f32.gmra.mrb[8].mxu1 %v5657_v9  ;;  %4759 = vmatmul.mubr.f32.gmra.mrb[8].mxu0 %v5657_v9 }
  0xb7   : > { %4413 = vmatprep.mubr.f32.mxu1 %v5659_v39  ;;  %4761 = vmatprep.mubr.f32.mxu0 %v5659_v39 }
  0xb8   : > { %5017 = vmatpush3.bf16.msra.mxu1 %v6298_v22  ;;  %5077 = vmatpush3.bf16.msra.mxu0 %v5534_v30  ;;  %v7069_v30 = vld [vmem:[#allocation26_spill] sm:$0xff]  ;;  %v7074_v22 = vld [vmem:[#allocation35_spill] sm:$0xff] }
  0xba   : > { %4414 = vmatmul.mubr.f32.gmra.mrb[10].mxu1 %v5673_v48  ;;  %4762 = vmatmul.mubr.f32.gmra.mrb[10].mxu0 %v5673_v48 }
  0xbb   : > { %4416 = vmatprep.mubr.f32.mxu1 %v5675_v49  ;;  %4764 = vmatprep.mubr.f32.mxu0 %v5675_v49 }
  0xbe   : > { %4417 = vmatmul.mubr.f32.gmra.mrb[12].mxu1 %v7063_v13  ;;  %4765 = vmatmul.mubr.f32.gmra.mrb[12].mxu0 %v7063_v13 }
  0xbf   : > { %4419 = vmatprep.mubr.f32.mxu1 %v7064_v14  ;;  %4767 = vmatprep.mubr.f32.mxu0 %v7064_v14 }
  0xc2   : > { %4420 = vmatmul.mubr.f32.gmra.mrb[14].mxu1 %v7065_v17  ;;  %4768 = vmatmul.mubr.f32.gmra.mrb[14].mxu0 %v7065_v17 }
  0xc3   : > { %4422 = vmatprep.mubr.f32.mxu1 %v7066_v25  ;;  %4770 = vmatprep.mubr.f32.mxu0 %v7066_v25 }
  0xc6   : > { %4423 = vmatmul.mubr.f32.gmra.mrb[16].mxu1 %v7067_v26  ;;  %4771 = vmatmul.mubr.f32.gmra.mrb[16].mxu0 %v7067_v26 }
  0xc7   : > { %4425 = vmatprep.mubr.f32.mxu1 %v7068_v29  ;;  %4773 = vmatprep.mubr.f32.mxu0 %v7068_v29 }
  0xca   : > { %4426 = vmatmul.mubr.f32.gmra.mrb[18].mxu1 %v7069_v30  ;;  %4774 = vmatmul.mubr.f32.gmra.mrb[18].mxu0 %v7069_v30 }
  0xcb   : > { %4428 = vmatprep.mubr.f32.mxu1 %v7070_v35  ;;  %4776 = vmatprep.mubr.f32.mxu0 %v7070_v35 }
  0xce   : > { %4429 = vmatmul.mubr.f32.gmra.mrb[20].mxu1 %v7071_v3  ;;  %4777 = vmatmul.mubr.f32.gmra.mrb[20].mxu0 %v7071_v3 }
  0xcf   : > { %4431 = vmatprep.mubr.f32.mxu1 %v7072_v53  ;;  %4779 = vmatprep.mubr.f32.mxu0 %v7072_v53 }
  0xd2   : > { %4432 = vmatmul.mubr.f32.gmra.mrb[22].mxu1 %v7073_v51  ;;  %4780 = vmatmul.mubr.f32.gmra.mrb[22].mxu0 %v7073_v51 }
  0xd3   : > { %4434 = vmatprep.mubr.f32.mxu1 %v7074_v22  ;;  %4782 = vmatprep.mubr.f32.mxu0 %v7074_v22 }
  0xd6   : > { %4435 = vmatmul.mubr.f32.gmra.mrb[24].mxu1 %v7075_v52  ;;  %4783 = vmatmul.mubr.f32.gmra.mrb[24].mxu0 %v7075_v52 }
  0xd7   : > { %4437 = vmatprep.mubr.f32.mxu1 %v7076_v50  ;;  %4785 = vmatprep.mubr.f32.mxu0 %v7076_v50 }
  0xda   : > { %4438 = vmatmul.mubr.f32.gmra.mrb[26].mxu1 %v7077_v20  ;;  %4786 = vmatmul.mubr.f32.gmra.mrb[26].mxu0 %v7077_v20 }
  0xdb   : > { %4440 = vmatprep.mubr.f32.mxu1 %v7078_v56  ;;  %4788 = vmatprep.mubr.f32.mxu0 %v7078_v56 }
  0xde   : > { %4441 = vmatmul.mubr.f32.gmra.mrb[28].mxu1 %v7079_v4  ;;  %4789 = vmatmul.mubr.f32.gmra.mrb[28].mxu0 %v7079_v4 }
  0xdf   : > { %4443 = vmatprep.mubr.f32.mxu1 %v7080_v12  ;;  %4791 = vmatprep.mubr.f32.mxu0 %v7080_v12 }
  0xe2   : > { %4444 = vmatmul.mubr.f32.gmra.mrb[30].mxu1 %v7081_v1  ;;  %4792 = vmatmul.mubr.f32.gmra.mrb[30].mxu0 %v7081_v1 }
  0xe3   : > { %4446 = vmatprep.mubr.f32.mxu1 %v7082_v63  ;;  %4794 = vmatprep.mubr.f32.mxu0 %v7082_v63 }
  0xe6   : > { %4447 = vmatmul.mubr.f32.gmra.mrb[32].mxu1 %v7083_v23  ;;  %4795 = vmatmul.mubr.f32.gmra.mrb[32].mxu0 %v7083_v23 }
  0xe7   : > { %4449 = vmatprep.mubr.f32.mxu1 %v5965_v21  ;;  %4797 = vmatprep.mubr.f32.mxu0 %v5965_v21 }
  0xea   : > { %4450 = vmatmul.mubr.f32.gmra.mrb[34].mxu1 %v5981_v37  ;;  %4798 = vmatmul.mubr.f32.gmra.mrb[34].mxu0 %v5981_v37 }
  0xeb   : > { %4452 = vmatprep.mubr.f32.mxu1 %v7084_v11  ;;  %4800 = vmatprep.mubr.f32.mxu0 %v7084_v11 }
  0xee   : > { %4453 = vmatmul.mubr.f32.gmra.mrb[36].mxu1 %v7085_v8  ;;  %4801 = vmatmul.mubr.f32.gmra.mrb[36].mxu0 %v7085_v8 }
  0xef   : > { %4455 = vmatprep.mubr.f32.mxu1 %v7086_v54  ;;  %4803 = vmatprep.mubr.f32.mxu0 %v7086_v54 }
  0xf2   : > { %4456 = vmatmul.mubr.f32.gmra.mrb[38].mxu1 %v7087_v55  ;;  %4804 = vmatmul.mubr.f32.gmra.mrb[38].mxu0 %v7087_v55 }
  0xf3   : > { %4458 = vmatprep.mubr.f32.mxu1 %v7088_v24  ;;  %4806 = vmatprep.mubr.f32.mxu0 %v7088_v24 }
  0xf6   : > { %4459 = vmatmul.mubr.f32.gmra.mrb[40].mxu1 %v7089_v7  ;;  %4807 = vmatmul.mubr.f32.gmra.mrb[40].mxu0 %v7089_v7 }
  0xf7   : > { %4461 = vmatprep.mubr.f32.mxu1 %v7090_v44  ;;  %4809 = vmatprep.mubr.f32.mxu0 %v7090_v44 }
  0xfa   : > { %4462 = vmatmul.mubr.f32.gmra.mrb[42].mxu1 %v7091_v33  ;;  %4810 = vmatmul.mubr.f32.gmra.mrb[42].mxu0 %v7091_v33 }
  0xfb   : > { %4464 = vmatprep.mubr.f32.mxu1 %v7092_v31  ;;  %4812 = vmatprep.mubr.f32.mxu0 %v7092_v31 }
  0xfe   : > { %4465 = vmatmul.mubr.f32.gmra.mrb[44].mxu1 %v7093_v32  ;;  %4813 = vmatmul.mubr.f32.gmra.mrb[44].mxu0 %v7093_v32 }
  0xff   : > { %4467 = vmatprep.mubr.f32.mxu1 %v7094_v5  ;;  %4815 = vmatprep.mubr.f32.mxu0 %v7094_v5 }
 0x102   : > { %4468 = vmatmul.mubr.f32.gmra.mrb[46].mxu1 %v6125_v36  ;;  %4816 = vmatmul.mubr.f32.gmra.mrb[46].mxu0 %v6125_v36 }
 0x103   : > { %4470 = vmatprep.mubr.f32.mxu1 %v7095_v40  ;;  %4818 = vmatprep.mubr.f32.mxu0 %v7095_v40 }
 0x106   : > { %4471 = vmatmul.mubr.f32.gmra.mrb[48].mxu1 %v6156_v46  ;;  %4819 = vmatmul.mubr.f32.gmra.mrb[48].mxu0 %v6156_v46 }
 0x107   : > { %4473 = vmatprep.mubr.f32.mxu1 %v7096_v27  ;;  %4821 = vmatprep.mubr.f32.mxu0 %v7096_v27 }
 0x10a   : > { %4474 = vmatmul.mubr.f32.gmra.mrb[50].mxu1 %v6182_v0  ;;  %4822 = vmatmul.mubr.f32.gmra.mrb[50].mxu0 %v6182_v0 }
 0x10b   : > { %4476 = vmatprep.mubr.f32.mxu1 %v6191_v16  ;;  %4824 = vmatprep.mubr.f32.mxu0 %v6191_v16 }
 0x10e   : > { %4477 = vmatmul.mubr.f32.gmra.mrb[52].mxu1 %v7097_v19  ;;  %4825 = vmatmul.mubr.f32.gmra.mrb[52].mxu0 %v7097_v19 }
 0x10f   : > { %4479 = vmatprep.mubr.f32.mxu1 %v7098_v41  ;;  %4827 = vmatprep.mubr.f32.mxu0 %v7098_v41 }
 0x112   : > { %4480 = vmatmul.mubr.f32.gmra.mrb[54].mxu1 %v7099_v47  ;;  %4828 = vmatmul.mubr.f32.gmra.mrb[54].mxu0 %v7099_v47 }
 0x113   : > { %4482 = vmatprep.mubr.f32.mxu1 %v7100_v15  ;;  %4830 = vmatprep.mubr.f32.mxu0 %v7100_v15 }
 0x116   : > { %4483 = vmatmul.mubr.f32.gmra.mrb[56].mxu1 %v7101_v62  ;;  %4831 = vmatmul.mubr.f32.gmra.mrb[56].mxu0 %v7101_v62 }
 0x117   : > { %4485 = vmatprep.mubr.f32.mxu1 %v6255_v18  ;;  %4833 = vmatprep.mubr.f32.mxu0 %v6255_v18  ;;  %v7102_v18 = vld [vmem:[#allocation2_spill] sm:$0xff] }
 0x11a   : > { %4486 = vmatmul.mubr.f32.gmra.mrb[58].mxu1 %v6274_v2  ;;  %4834 = vmatmul.mubr.f32.gmra.mrb[58].mxu0 %v6274_v2  ;;  %v7103_v2 = vld [vmem:[#allocation3_spill] sm:$0xff] }
 0x11b   : > { %4488 = vmatprep.mubr.f32.mxu1 %v6276_v61  ;;  %4836 = vmatprep.mubr.f32.mxu0 %v6276_v61  ;;  %v7104_v61 = vld [vmem:[#allocation4_spill] sm:$0xff] }
 0x11e   : > { %4489 = vmatmul.mubr.f32.gmra.mrb[60].mxu1 %v6288_v6  ;;  %4837 = vmatmul.mubr.f32.gmra.mrb[60].mxu0 %v6288_v6  ;;  %v7105_v6 = vld [vmem:[#allocation5_spill] sm:$0xff] }
 0x11f   : > { %4491 = vmatprep.mubr.f32.mxu1 %v6293_v10  ;;  %4839 = vmatprep.mubr.f32.mxu0 %v6293_v10  ;;  %v7106_v10 = vld [vmem:[#allocation6_spill] sm:$0xff] }
 0x122   : > { %4492 = vmatmul.mubr.f32.gmra.mrb[62].mxu1 %v6305_v34  ;;  %4840 = vmatmul.mubr.f32.gmra.mrb[62].mxu0 %v6305_v34  ;;  %v7107_v34 = vld [vmem:[#allocation7_spill] sm:$0xff] }
 0x123   : > { %4514 = vmatprep.mubr.f32.mxu1 %v7102_v18  ;;  %4862 = vmatprep.mubr.f32.mxu0 %v5554_v42  ;;  %v7108_v42 = vld [vmem:[#allocation8_spill] sm:$0xff]  ;;  %v7121_v18 = vld [vmem:[#allocation30_spill] sm:$0xff] }
 0x126   : > { %4515 = vmatmul.mubr.f32.vlgmr.msra.gmra.mrb[0].mxu1 %v7103_v2  ;;  %4863 = vmatmul.mubr.f32.vlgmr.msra.gmra.mrb[0].mxu0 %v5556_v43  ;;  %v7109_v43 = vld [vmem:[#allocation9_spill] sm:$0xff] }
 0x127   : > { %4517 = vmatprep.mubr.f32.mxu1 %v7104_v61  ;;  %4865 = vmatprep.mubr.f32.mxu0 %v5559_v45  ;;  %v7110_v45 = vld [vmem:[#allocation10_spill] sm:$0xff]  ;;  %v7122_v61 = vld [vmem:[#allocation31_spill] sm:$0xff]  ;;  %v7123_v2 = vld [vmem:[#allocation33_spill] sm:$0xff] }
 0x12a   : > { %4518 = vmatmul.mubr.f32.gmra.mrb[2].mxu1 %v7105_v6  ;;  %4866 = vmatmul.mubr.f32.gmra.mrb[2].mxu0 %v5579_v57  ;;  %v7111_v57 = vld [vmem:[#allocation11_spill] sm:$0xff]  ;;  %v7124_v6 = vld [vmem:[#allocation36_spill] sm:$0xff] }
 0x12b   : > { %4520 = vmatprep.mubr.f32.mxu1 %v7106_v10  ;;  %4868 = vmatprep.mubr.f32.mxu0 %v5581_v58  ;;  %v7112_v58 = vld [vmem:[#allocation12_spill] sm:$0xff]  ;;  %v7125_v10 = vld [vmem:[#allocation37_spill] sm:$0xff] }
 0x12e   : > { %4521 = vmatmul.mubr.f32.gmra.mrb[4].mxu1 %v7107_v34  ;;  %4869 = vmatmul.mubr.f32.gmra.mrb[4].mxu0 %v5583_v59  ;;  %v7113_v59 = vld [vmem:[#allocation14_spill] sm:$0xff] }
 0x12f   : > { %4523 = vmatprep.mubr.f32.mxu1 %v7108_v42  ;;  %4871 = vmatprep.mubr.f32.mxu0 %v5585_v60  ;;  %v7114_v60 = vld [vmem:[#allocation15_spill] sm:$0xff]  ;;  %v7126_v34 = vld [vmem:[#allocation38_spill] sm:$0xff] }
 0x132   : > { %4524 = vmatmul.mubr.f32.gmra.mrb[6].mxu1 %v7109_v43  ;;  %4872 = vmatmul.mubr.f32.gmra.mrb[6].mxu0 %v5610_v28  ;;  %v7115_v28 = vld [vmem:[#allocation17_spill] sm:$0xff] }
 0x133   : > { %4526 = vmatprep.mubr.f32.mxu1 %v7110_v45  ;;  %4874 = vmatprep.mubr.f32.mxu0 %v5655_v38  ;;  %v7116_v38 = vld [vmem:[#allocation19_spill] sm:$0xff] }
 0x136   : > { %4527 = vmatmul.mubr.f32.gmra.mrb[8].mxu1 %v7111_v57  ;;  %4875 = vmatmul.mubr.f32.gmra.mrb[8].mxu0 %v5657_v9  ;;  %v7117_v9 = vld [vmem:[#allocation21_spill] sm:$0xff] }
 0x137   : > { %4529 = vmatprep.mubr.f32.mxu1 %v7112_v58  ;;  %4877 = vmatprep.mubr.f32.mxu0 %v5659_v39  ;;  %v7118_v39 = vld [vmem:[#allocation23_spill] sm:$0xff] }
 0x13a   : > { %4530 = vmatmul.mubr.f32.gmra.mrb[10].mxu1 %v7113_v59  ;;  %4878 = vmatmul.mubr.f32.gmra.mrb[10].mxu0 %v5673_v48  ;;  %v7119_v48 = vld [vmem:[#allocation25_spill] sm:$0xff] }
 0x13b   : > { %4532 = vmatprep.mubr.f32.mxu1 %v7114_v60  ;;  %4880 = vmatprep.mubr.f32.mxu0 %v5675_v49  ;;  %v7120_v49 = vld [vmem:[#allocation27_spill] sm:$0xff] }
 0x13e   : > { %4533 = vmatmul.mubr.f32.gmra.mrb[12].mxu1 %v7115_v28  ;;  %4881 = vmatmul.mubr.f32.gmra.mrb[12].mxu0 %v7063_v13  ;;  %v7127_v13 = vld [vmem:[#allocation42_spill] sm:$0xff] }
 0x13f   : > { %4535 = vmatprep.mubr.f32.mxu1 %v7116_v38  ;;  %4883 = vmatprep.mubr.f32.mxu0 %v7064_v14  ;;  %v7128_v14 = vld [vmem:[#allocation43_spill] sm:$0xff] }
 0x142   : > { %4536 = vmatmul.mubr.f32.gmra.mrb[14].mxu1 %v7117_v9  ;;  %4884 = vmatmul.mubr.f32.gmra.mrb[14].mxu0 %v7065_v17  ;;  %v7129_v17 = vld [vmem:[#allocation44_spill] sm:$0xff] }
 0x143   : > { %4538 = vmatprep.mubr.f32.mxu1 %v7118_v39  ;;  %4886 = vmatprep.mubr.f32.mxu0 %v7066_v25  ;;  %v7130_v25 = vld [vmem:[#allocation47_spill] sm:$0xff] }
 0x146   : > { %4539 = vmatmul.mubr.f32.gmra.mrb[16].mxu1 %v7119_v48  ;;  %4887 = vmatmul.mubr.f32.gmra.mrb[16].mxu0 %v7067_v26  ;;  %v7131_v26 = vld [vmem:[#allocation49_spill] sm:$0xff] }
 0x147   : > { %4541 = vmatprep.mubr.f32.mxu1 %v7120_v49  ;;  %4889 = vmatprep.mubr.f32.mxu0 %v7068_v29  ;;  %v7132_v29 = vld [vmem:[#allocation52_spill] sm:$0xff] }
 0x14a   : > { %4542 = vmatmul.mubr.f32.gmra.mrb[18].mxu1 %v7121_v18  ;;  %4890 = vmatmul.mubr.f32.gmra.mrb[18].mxu0 %v7069_v30  ;;  %v7133_v30 = vld [vmem:[#allocation54_spill] sm:$0xff] }
 0x14b   : > { %4544 = vmatprep.mubr.f32.mxu1 %v7122_v61  ;;  %4892 = vmatprep.mubr.f32.mxu0 %v7070_v35  ;;  %v7134_v35 = vld [vmem:[#allocation55_spill] sm:$0xff] }
 0x14e   : > { %4545 = vmatmul.mubr.f32.gmra.mrb[20].mxu1 %v7123_v2  ;;  %4893 = vmatmul.mubr.f32.gmra.mrb[20].mxu0 %v7071_v3  ;;  %v7135_v3 = vld [vmem:[#allocation56_spill] sm:$0xff] }
 0x14f   : > { %4547 = vmatprep.mubr.f32.mxu1 %v7124_v6  ;;  %4895 = vmatprep.mubr.f32.mxu0 %v7072_v53  ;;  %v7136_v53 = vld [vmem:[#allocation57_spill] sm:$0xff] }
 0x152   : > { %4548 = vmatmul.mubr.f32.gmra.mrb[22].mxu1 %v7125_v10  ;;  %4896 = vmatmul.mubr.f32.gmra.mrb[22].mxu0 %v7073_v51  ;;  %v7137_v51 = vld [vmem:[#allocation60_spill] sm:$0xff] }
 0x153   : > { %4550 = vmatprep.mubr.f32.mxu1 %v7126_v34  ;;  %4898 = vmatprep.mubr.f32.mxu0 %v7074_v22  ;;  %v7138_v22 = vld [vmem:[#allocation62_spill] sm:$0xff] }
 0x156   : > { %4551 = vmatmul.mubr.f32.gmra.mrb[24].mxu1 %v7127_v13  ;;  %4899 = vmatmul.mubr.f32.gmra.mrb[24].mxu0 %v7075_v52  ;;  %v7139_v52 = vld [vmem:[#allocation64_spill] sm:$0xff] }
 0x157   : > { %4553 = vmatprep.mubr.f32.mxu1 %v7128_v14  ;;  %4901 = vmatprep.mubr.f32.mxu0 %v7076_v50  ;;  %v7140_v50 = vld [vmem:[#allocation65_spill] sm:$0xff] }
 0x15a   : > { %4554 = vmatmul.mubr.f32.gmra.mrb[26].mxu1 %v7129_v17  ;;  %4902 = vmatmul.mubr.f32.gmra.mrb[26].mxu0 %v7077_v20  ;;  %v7141_v20 = vld [vmem:[#allocation66_spill] sm:$0xff] }
 0x15b   : > { %4556 = vmatprep.mubr.f32.mxu1 %v7130_v25  ;;  %4904 = vmatprep.mubr.f32.mxu0 %v7078_v56  ;;  %v7144_v56 = vld [vmem:[#allocation72_spill] sm:$0xff] }
 0x15e   : > { %4557 = vmatmul.mubr.f32.gmra.mrb[28].mxu1 %v7131_v26  ;;  %4905 = vmatmul.mubr.f32.gmra.mrb[28].mxu0 %v7079_v4  ;;  %v7145_v4 = vld [vmem:[#allocation76_spill] sm:$0xff] }
 0x15f   : > { %4559 = vmatprep.mubr.f32.mxu1 %v7132_v29  ;;  %4907 = vmatprep.mubr.f32.mxu0 %v7080_v12  ;;  %v7146_v12 = vld [vmem:[#allocation77_spill] sm:$0xff] }
 0x162   : > { %4560 = vmatmul.mubr.f32.gmra.mrb[30].mxu1 %v7133_v30  ;;  %4908 = vmatmul.mubr.f32.gmra.mrb[30].mxu0 %v7081_v1  ;;  %v7147_v1 = vld [vmem:[#allocation79_spill] sm:$0xff] }
 0x163   : > { %4562 = vmatprep.mubr.f32.mxu1 %v7134_v35  ;;  %4910 = vmatprep.mubr.f32.mxu0 %v7082_v63  ;;  %v7148_v63 = vld [vmem:[#allocation81_spill] sm:$0xff] }
 0x166   : > { %4563 = vmatmul.mubr.f32.gmra.mrb[32].mxu1 %v7135_v3  ;;  %4911 = vmatmul.mubr.f32.gmra.mrb[32].mxu0 %v7083_v23  ;;  %v7149_v23 = vld [vmem:[#allocation82_spill] sm:$0xff] }
 0x167   : > { %4565 = vmatprep.mubr.f32.mxu1 %v7136_v53  ;;  %4913 = vmatprep.mubr.f32.mxu0 %v5965_v21  ;;  %v7142_v21 = vld [vmem:[#allocation70_spill] sm:$0xff] }
 0x16a   : > { %4566 = vmatmul.mubr.f32.gmra.mrb[34].mxu1 %v7137_v51  ;;  %4914 = vmatmul.mubr.f32.gmra.mrb[34].mxu0 %v5981_v37  ;;  %v7143_v37 = vld [vmem:[#allocation71_spill] sm:$0xff] }
 0x16b   : > { %4568 = vmatprep.mubr.f32.mxu1 %v7138_v22  ;;  %4916 = vmatprep.mubr.f32.mxu0 %v7084_v11  ;;  %v7150_v11 = vld [vmem:[#allocation83_spill] sm:$0xff] }
 0x16e   : > { %4569 = vmatmul.mubr.f32.gmra.mrb[36].mxu1 %v7139_v52  ;;  %4917 = vmatmul.mubr.f32.gmra.mrb[36].mxu0 %v7085_v8  ;;  %v7151_v8 = vld [vmem:[#allocation85_spill] sm:$0xff] }
 0x16f   : > { %4571 = vmatprep.mubr.f32.mxu1 %v7140_v50  ;;  %4919 = vmatprep.mubr.f32.mxu0 %v7086_v54  ;;  %v7152_v54 = vld [vmem:[#allocation86_spill] sm:$0xff] }
 0x172   : > { %4572 = vmatmul.mubr.f32.gmra.mrb[38].mxu1 %v7141_v20  ;;  %4920 = vmatmul.mubr.f32.gmra.mrb[38].mxu0 %v7087_v55  ;;  %v7162_v55 = vld [vmem:[#allocation103_spill] sm:$0xff] }
 0x173   : > { %4574 = vmatprep.mubr.f32.mxu1 %v7142_v21  ;;  %4922 = vmatprep.mubr.f32.mxu0 %v7088_v24  ;;  %v7164_v24 = vld [vmem:[#allocation105_spill] sm:$0xff] }
 0x176   : > { %4575 = vmatmul.mubr.f32.gmra.mrb[40].mxu1 %v7143_v37  ;;  %4923 = vmatmul.mubr.f32.gmra.mrb[40].mxu0 %v7089_v7  ;;  %v7166_v7 = vld [vmem:[#allocation107_spill] sm:$0xff] }
 0x177   : > { %4577 = vmatprep.mubr.f32.mxu1 %v7144_v56  ;;  %4925 = vmatprep.mubr.f32.mxu0 %v7090_v44  ;;  %v7168_v44 = vld [vmem:[#allocation109_spill] sm:$0xff] }
 0x17a   : > { %4578 = vmatmul.mubr.f32.gmra.mrb[42].mxu1 %v7145_v4  ;;  %4926 = vmatmul.mubr.f32.gmra.mrb[42].mxu0 %v7091_v33  ;;  %v7169_v33 = vld [vmem:[#allocation106_spill] sm:$0xff] }
 0x17b   : > { %4580 = vmatprep.mubr.f32.mxu1 %v7146_v12  ;;  %4928 = vmatprep.mubr.f32.mxu0 %v7092_v31  ;;  %v7171_v31 = vld [vmem:[#allocation108_spill] sm:$0xff] }
 0x17e   : > { %4581 = vmatmul.mubr.f32.gmra.mrb[44].mxu1 %v7147_v1  ;;  %4929 = vmatmul.mubr.f32.gmra.mrb[44].mxu0 %v7093_v32  ;;  %v7153_v32 = vld [vmem:[#allocation89_spill] sm:$0xff] }
 0x17f   : > { %4583 = vmatprep.mubr.f32.mxu1 %v7148_v63  ;;  %4931 = vmatprep.mubr.f32.mxu0 %v7094_v5  ;;  %v7154_v5 = vld [vmem:[#allocation90_spill] sm:$0xff] }
 0x182   : > { %4584 = vmatmul.mubr.f32.gmra.mrb[46].mxu1 %v7149_v23  ;;  %4932 = vmatmul.mubr.f32.gmra.mrb[46].mxu0 %v6125_v36  ;;  %v7155_v36 = vld [vmem:[#allocation91_spill] sm:$0xff] }
 0x183   : > { %4586 = vmatprep.mubr.f32.mxu1 %v7150_v11  ;;  %4934 = vmatprep.mubr.f32.mxu0 %v7095_v40  ;;  %v7156_v40 = vld [vmem:[#allocation92_spill] sm:$0xff] }
 0x186   : > { %4587 = vmatmul.mubr.f32.gmra.mrb[48].mxu1 %v7151_v8  ;;  %4935 = vmatmul.mubr.f32.gmra.mrb[48].mxu0 %v6156_v46  ;;  %v7157_v46 = vld [vmem:[#allocation95_spill] sm:$0xff] }
 0x187   : > { %4589 = vmatprep.mubr.f32.mxu1 %v7152_v54  ;;  %4937 = vmatprep.mubr.f32.mxu0 %v7096_v27  ;;  %v7158_v27 = vld [vmem:[#allocation96_spill] sm:$0xff] }
 0x18a   : > { %4590 = vmatmul.mubr.f32.gmra.mrb[50].mxu1 %v7153_v32  ;;  %4938 = vmatmul.mubr.f32.gmra.mrb[50].mxu0 %v6182_v0  ;;  %v7159_v0 = vld [vmem:[#allocation99_spill] sm:$0xff] }
 0x18b   : > { %4592 = vmatprep.mubr.f32.mxu1 %v7154_v5  ;;  %4940 = vmatprep.mubr.f32.mxu0 %v6191_v16  ;;  %v7160_v16 = vld [vmem:[#allocation100_spill] sm:$0xff] }
 0x18e   : > { %4593 = vmatmul.mubr.f32.gmra.mrb[52].mxu1 %v7155_v36  ;;  %4941 = vmatmul.mubr.f32.gmra.mrb[52].mxu0 %v7097_v19  ;;  %v7161_v19 = vld [vmem:[#allocation98_spill] sm:$0xff] }
 0x18f   : > { %4595 = vmatprep.mubr.f32.mxu1 %v7156_v40  ;;  %4943 = vmatprep.mubr.f32.mxu0 %v7098_v41  ;;  %v7163_v41 = vld [vmem:[#allocation101_spill] sm:$0xff] }
 0x192   : > { %4596 = vmatmul.mubr.f32.gmra.mrb[54].mxu1 %v7157_v46  ;;  %4944 = vmatmul.mubr.f32.gmra.mrb[54].mxu0 %v7099_v47  ;;  %v7165_v47 = vld [vmem:[#allocation102_spill] sm:$0xff] }
 0x193   : > { %4598 = vmatprep.mubr.f32.mxu1 %v7158_v27  ;;  %4946 = vmatprep.mubr.f32.mxu0 %v7100_v15  ;;  %v7167_v15 = vld [vmem:[#allocation104_spill] sm:$0xff] }
 0x196   : > { %4599 = vmatmul.mubr.f32.gmra.mrb[56].mxu1 %v7159_v0  ;;  %4947 = vmatmul.mubr.f32.gmra.mrb[56].mxu0 %v7101_v62  ;;  %v7170_v62 = vld [vmem:[#allocation110_spill] sm:$0xff] }
 0x197   : > { %4601 = vmatprep.mubr.f32.mxu1 %v7160_v16  ;;  %4949 = vmatprep.mubr.f32.mxu0 %v7161_v19 }
 0x19a   : > { %4602 = vmatmul.mubr.f32.gmra.mrb[58].mxu1 %v7162_v55  ;;  %4950 = vmatmul.mubr.f32.gmra.mrb[58].mxu0 %v7163_v41 }
 0x19b   : > { %4604 = vmatprep.mubr.f32.mxu1 %v7164_v24  ;;  %4952 = vmatprep.mubr.f32.mxu0 %v7165_v47 }
 0x19e   : > { %4605 = vmatmul.mubr.f32.gmra.mrb[60].mxu1 %v7166_v7  ;;  %4953 = vmatmul.mubr.f32.gmra.mrb[60].mxu0 %v7167_v15 }
 0x19f   : > { %4607 = vmatprep.mubr.f32.mxu1 %v7168_v44  ;;  %4955 = vmatprep.mubr.f32.mxu0 %v7169_v33 }
 0x1a2   : > { %4608 = vmatmul.mubr.f32.gmra.mrb[62].mxu1 %v7170_v62  ;;  %4956 = vmatmul.mubr.f32.gmra.mrb[62].mxu0 %v7171_v31 }
 0x1f9   : > { %v4516_v42 = vpop.f32.mrb[0].mxu1  ;;  %v4864_v43 = vpop.f32.mrb[0].mxu0 }
 0x1fa   : > { %v5078_v45 = vadd.f32 %v4864_v43, %v4516_v42  ;;  %v1716_v57 = vpop.f32.mrb[1].mxu1  ;;  %v3304_v58 = vpop.f32.mrb[1].mxu0 }
 0x1fb   : > { %v5079_v59 = vadd.f32 %v3304_v58, %v1716_v57 }
 0x1fc   : > { %3688 = vst.msk [vmem:[%s6602_s11 + $0x8] sm:$0xff] %vm3686_vm1, %v5078_v45 }
 0x1fd   : > { %3687 = vst.msk [vmem:[%s6602_s11] sm:$0xff] %vm3686_vm1, %v5079_v59  ;;  %v4519_v60 = vpop.f32.mrb[2].mxu1  ;;  %v4867_v28 = vpop.f32.mrb[2].mxu0 }
 0x1fe   : > { %v5080_v38 = vadd.f32 %v4867_v28, %v4519_v60  ;;  %v1730_v9 = vpop.f32.mrb[3].mxu1  ;;  %v3316_v39 = vpop.f32.mrb[3].mxu0 }
 0x1ff   : > { %v5081_v48 = vadd.f32 %v3316_v39, %v1730_v9 }
 0x200   : > { %3690 = vst.msk [vmem:[%s6602_s11 + $0x18] sm:$0xff] %vm3686_vm1, %v5080_v38 }
 0x201   : > { %3689 = vst.msk [vmem:[%s6602_s11 + $0x10] sm:$0xff] %vm3686_vm1, %v5081_v48  ;;  %v4522_v49 = vpop.f32.mrb[4].mxu1  ;;  %v4870_v18 = vpop.f32.mrb[4].mxu0 }
 0x202   : > { %v5082_v61 = vadd.f32 %v4870_v18, %v4522_v49  ;;  %v1744_v2 = vpop.f32.mrb[5].mxu1  ;;  %v3328_v6 = vpop.f32.mrb[5].mxu0 }
 0x203   : > { %v5083_v10 = vadd.f32 %v3328_v6, %v1744_v2 }
 0x204   : > { %3692 = vst.msk [vmem:[%s6602_s11 + $0x28] sm:$0xff] %vm3686_vm1, %v5082_v61 }
 0x205   : > { %3691 = vst.msk [vmem:[%s6602_s11 + $0x20] sm:$0xff] %vm3686_vm1, %v5083_v10  ;;  %v4525_v34 = vpop.f32.mrb[6].mxu1  ;;  %v4873_v13 = vpop.f32.mrb[6].mxu0 }
 0x206   : > { %v5084_v14 = vadd.f32 %v4873_v13, %v4525_v34  ;;  %v1758_v17 = vpop.f32.mrb[7].mxu1  ;;  %v3340_v25 = vpop.f32.mrb[7].mxu0 }
 0x207   : > { %v5085_v26 = vadd.f32 %v3340_v25, %v1758_v17 }
 0x208   : > { %3694 = vst.msk [vmem:[%s6602_s11 + $0x38] sm:$0xff] %vm3686_vm1, %v5084_v14 }
 0x209   : > { %3693 = vst.msk [vmem:[%s6602_s11 + $0x30] sm:$0xff] %vm3686_vm1, %v5085_v26  ;;  %v4528_v29 = vpop.f32.mrb[8].mxu1  ;;  %v4876_v30 = vpop.f32.mrb[8].mxu0 }
 0x20a   : > { %v5086_v35 = vadd.f32 %v4876_v30, %v4528_v29  ;;  %v1772_v3 = vpop.f32.mrb[9].mxu1  ;;  %v3352_v53 = vpop.f32.mrb[9].mxu0 }
 0x20b   : > { %v5087_v51 = vadd.f32 %v3352_v53, %v1772_v3 }
 0x20c   : > { %3696 = vst.msk [vmem:[%s6602_s11 + $0x48] sm:$0xff] %vm3686_vm1, %v5086_v35 }
 0x20d   : > { %3695 = vst.msk [vmem:[%s6602_s11 + $0x40] sm:$0xff] %vm3686_vm1, %v5087_v51  ;;  %v4531_v22 = vpop.f32.mrb[10].mxu1  ;;  %v4879_v52 = vpop.f32.mrb[10].mxu0 }
 0x20e   : > { %v5088_v50 = vadd.f32 %v4879_v52, %v4531_v22  ;;  %v1786_v20 = vpop.f32.mrb[11].mxu1  ;;  %v3364_v21 = vpop.f32.mrb[11].mxu0 }
 0x20f   : > { %v5089_v37 = vadd.f32 %v3364_v21, %v1786_v20 }
 0x210   : > { %3698 = vst.msk [vmem:[%s6602_s11 + $0x58] sm:$0xff] %vm3686_vm1, %v5088_v50 }
 0x211   : > { %3697 = vst.msk [vmem:[%s6602_s11 + $0x50] sm:$0xff] %vm3686_vm1, %v5089_v37  ;;  %v4534_v56 = vpop.f32.mrb[12].mxu1  ;;  %v4882_v4 = vpop.f32.mrb[12].mxu0 }
 0x212   : > { %v5090_v12 = vadd.f32 %v4882_v4, %v4534_v56  ;;  %v1800_v1 = vpop.f32.mrb[13].mxu1  ;;  %v3376_v63 = vpop.f32.mrb[13].mxu0 }
 0x213   : > { %v5091_v23 = vadd.f32 %v3376_v63, %v1800_v1 }
 0x214   : > { %3700 = vst.msk [vmem:[%s6602_s11 + $0x68] sm:$0xff] %vm3686_vm1, %v5090_v12 }
 0x215   : > { %3699 = vst.msk [vmem:[%s6602_s11 + $0x60] sm:$0xff] %vm3686_vm1, %v5091_v23  ;;  %v4537_v11 = vpop.f32.mrb[14].mxu1  ;;  %v4885_v8 = vpop.f32.mrb[14].mxu0 }
 0x216   : > { %v5092_v54 = vadd.f32 %v4885_v8, %v4537_v11  ;;  %v1814_v32 = vpop.f32.mrb[15].mxu1  ;;  %v3388_v5 = vpop.f32.mrb[15].mxu0 }
 0x217   : > { %v5093_v36 = vadd.f32 %v3388_v5, %v1814_v32 }
 0x218   : > { %3702 = vst.msk [vmem:[%s6602_s11 + $0x78] sm:$0xff] %vm3686_vm1, %v5092_v54 }
 0x219   : > { %3701 = vst.msk [vmem:[%s6602_s11 + $0x70] sm:$0xff] %vm3686_vm1, %v5093_v36  ;;  %v4540_v40 = vpop.f32.mrb[16].mxu1  ;;  %v4888_v46 = vpop.f32.mrb[16].mxu0 }
 0x21a   : > { %v5094_v27 = vadd.f32 %v4888_v46, %v4540_v40  ;;  %v1828_v0 = vpop.f32.mrb[17].mxu1  ;;  %v3400_v16 = vpop.f32.mrb[17].mxu0 }
 0x21b   : > { %v5095_v19 = vadd.f32 %v3400_v16, %v1828_v0 }
 0x21c   : > { %3704 = vst.msk [vmem:[%s6602_s11 + $0x88] sm:$0xff] %vm3686_vm1, %v5094_v27 }
 0x21d   : > { %3703 = vst.msk [vmem:[%s6602_s11 + $0x80] sm:$0xff] %vm3686_vm1, %v5095_v19  ;;  %v4543_v55 = vpop.f32.mrb[18].mxu1  ;;  %v4891_v41 = vpop.f32.mrb[18].mxu0 }
 0x21e   : > { %v5096_v24 = vadd.f32 %v4891_v41, %v4543_v55  ;;  %v1842_v47 = vpop.f32.mrb[19].mxu1  ;;  %v3412_v7 = vpop.f32.mrb[19].mxu0 }
 0x21f   : > { %v5097_v15 = vadd.f32 %v3412_v7, %v1842_v47 }
 0x220   : > { %3706 = vst.msk [vmem:[%s6602_s11 + $0x98] sm:$0xff] %vm3686_vm1, %v5096_v24 }
 0x221   : > { %3705 = vst.msk [vmem:[%s6602_s11 + $0x90] sm:$0xff] %vm3686_vm1, %v5097_v15  ;;  %v4546_v44 = vpop.f32.mrb[20].mxu1  ;;  %v4894_v33 = vpop.f32.mrb[20].mxu0 }
 0x222   : > { %v5098_v62 = vadd.f32 %v4894_v33, %v4546_v44  ;;  %v1856_v31 = vpop.f32.mrb[21].mxu1  ;;  %v3424_v42 = vpop.f32.mrb[21].mxu0 }
 0x223   : > { %v5099_v43 = vadd.f32 %v3424_v42, %v1856_v31 }
 0x224   : > { %3708 = vst.msk [vmem:[%s6602_s11 + $0xa8] sm:$0xff] %vm3686_vm1, %v5098_v62 }
 0x225   : > { %3707 = vst.msk [vmem:[%s6602_s11 + $0xa0] sm:$0xff] %vm3686_vm1, %v5099_v43  ;;  %v4549_v45 = vpop.f32.mrb[22].mxu1  ;;  %v4897_v57 = vpop.f32.mrb[22].mxu0 }
 0x226   : > { %v5100_v58 = vadd.f32 %v4897_v57, %v4549_v45  ;;  %v1870_v59 = vpop.f32.mrb[23].mxu1  ;;  %v3436_v60 = vpop.f32.mrb[23].mxu0 }
 0x227   : > { %v5101_v28 = vadd.f32 %v3436_v60, %v1870_v59 }
 0x228   : > { %3710 = vst.msk [vmem:[%s6602_s11 + $0xb8] sm:$0xff] %vm3686_vm1, %v5100_v58 }
 0x229   : > { %3709 = vst.msk [vmem:[%s6602_s11 + $0xb0] sm:$0xff] %vm3686_vm1, %v5101_v28  ;;  %v4552_v38 = vpop.f32.mrb[24].mxu1  ;;  %v4900_v9 = vpop.f32.mrb[24].mxu0 }
 0x22a   : > { %v5102_v39 = vadd.f32 %v4900_v9, %v4552_v38  ;;  %v1884_v48 = vpop.f32.mrb[25].mxu1  ;;  %v3448_v49 = vpop.f32.mrb[25].mxu0 }
 0x22b   : > { %v5103_v18 = vadd.f32 %v3448_v49, %v1884_v48 }
 0x22c   : > { %3712 = vst.msk [vmem:[%s6602_s11 + $0xc8] sm:$0xff] %vm3686_vm1, %v5102_v39 }
 0x22d   : > { %3711 = vst.msk [vmem:[%s6602_s11 + $0xc0] sm:$0xff] %vm3686_vm1, %v5103_v18  ;;  %v4555_v61 = vpop.f32.mrb[26].mxu1  ;;  %v4903_v2 = vpop.f32.mrb[26].mxu0 }
 0x22e   : > { %v5104_v6 = vadd.f32 %v4903_v2, %v4555_v61  ;;  %v1898_v10 = vpop.f32.mrb[27].mxu1  ;;  %v3460_v34 = vpop.f32.mrb[27].mxu0 }
 0x22f   : > { %v5105_v13 = vadd.f32 %v3460_v34, %v1898_v10 }
 0x230   : > { %3714 = vst.msk [vmem:[%s6602_s11 + $0xd8] sm:$0xff] %vm3686_vm1, %v5104_v6 }
 0x231   : > { %3713 = vst.msk [vmem:[%s6602_s11 + $0xd0] sm:$0xff] %vm3686_vm1, %v5105_v13  ;;  %v4558_v14 = vpop.f32.mrb[28].mxu1  ;;  %v4906_v17 = vpop.f32.mrb[28].mxu0 }
 0x232   : > { %v5106_v25 = vadd.f32 %v4906_v17, %v4558_v14  ;;  %v1912_v26 = vpop.f32.mrb[29].mxu1  ;;  %v3472_v29 = vpop.f32.mrb[29].mxu0 }
 0x233   : > { %v5107_v30 = vadd.f32 %v3472_v29, %v1912_v26 }
 0x234   : > { %3716 = vst.msk [vmem:[%s6602_s11 + $0xe8] sm:$0xff] %vm3686_vm1, %v5106_v25 }
 0x235   : > { %3715 = vst.msk [vmem:[%s6602_s11 + $0xe0] sm:$0xff] %vm3686_vm1, %v5107_v30  ;;  %v4561_v35 = vpop.f32.mrb[30].mxu1  ;;  %v4909_v3 = vpop.f32.mrb[30].mxu0 }
 0x236   : > { %v5108_v53 = vadd.f32 %v4909_v3, %v4561_v35  ;;  %v1926_v51 = vpop.f32.mrb[31].mxu1  ;;  %v3484_v22 = vpop.f32.mrb[31].mxu0 }
 0x237   : > { %v5109_v52 = vadd.f32 %v3484_v22, %v1926_v51 }
 0x238   : > { %3718 = vst.msk [vmem:[%s6602_s11 + $0xf8] sm:$0xff] %vm3686_vm1, %v5108_v53 }
 0x239   : > { %3717 = vst.msk [vmem:[%s6602_s11 + $0xf0] sm:$0xff] %vm3686_vm1, %v5109_v52  ;;  %v4564_v50 = vpop.f32.mrb[32].mxu1  ;;  %v4912_v20 = vpop.f32.mrb[32].mxu0 }
 0x23a   : > { %v5110_v21 = vadd.f32 %v4912_v20, %v4564_v50  ;;  %v1940_v37 = vpop.f32.mrb[33].mxu1  ;;  %v3496_v56 = vpop.f32.mrb[33].mxu0 }
 0x23b   : > { %v5111_v4 = vadd.f32 %v3496_v56, %v1940_v37 }
 0x23c   : > { %3720 = vst.msk [vmem:[%s6602_s11 + $0x108] sm:$0xff] %vm3686_vm1, %v5110_v21 }
 0x23d   : > { %3719 = vst.msk [vmem:[%s6602_s11 + $0x100] sm:$0xff] %vm3686_vm1, %v5111_v4  ;;  %v4567_v12 = vpop.f32.mrb[34].mxu1  ;;  %v4915_v1 = vpop.f32.mrb[34].mxu0 }
 0x23e   : > { %v5112_v63 = vadd.f32 %v4915_v1, %v4567_v12  ;;  %v1954_v23 = vpop.f32.mrb[35].mxu1  ;;  %v3508_v11 = vpop.f32.mrb[35].mxu0 }
 0x23f   : > { %v5113_v8 = vadd.f32 %v3508_v11, %v1954_v23 }
 0x240   : > { %3722 = vst.msk [vmem:[%s6602_s11 + $0x118] sm:$0xff] %vm3686_vm1, %v5112_v63 }
 0x241   : > { %3721 = vst.msk [vmem:[%s6602_s11 + $0x110] sm:$0xff] %vm3686_vm1, %v5113_v8  ;;  %v4570_v54 = vpop.f32.mrb[36].mxu1  ;;  %v4918_v32 = vpop.f32.mrb[36].mxu0 }
 0x242   : > { %v5114_v5 = vadd.f32 %v4918_v32, %v4570_v54  ;;  %v1968_v36 = vpop.f32.mrb[37].mxu1  ;;  %v3520_v40 = vpop.f32.mrb[37].mxu0 }
 0x243   : > { %v5115_v46 = vadd.f32 %v3520_v40, %v1968_v36 }
 0x244   : > { %3724 = vst.msk [vmem:[%s6602_s11 + $0x128] sm:$0xff] %vm3686_vm1, %v5114_v5 }
 0x245   : > { %3723 = vst.msk [vmem:[%s6602_s11 + $0x120] sm:$0xff] %vm3686_vm1, %v5115_v46  ;;  %v4573_v27 = vpop.f32.mrb[38].mxu1  ;;  %v4921_v0 = vpop.f32.mrb[38].mxu0 }
 0x246   : > { %v5116_v16 = vadd.f32 %v4921_v0, %v4573_v27  ;;  %v1982_v19 = vpop.f32.mrb[39].mxu1  ;;  %v3532_v55 = vpop.f32.mrb[39].mxu0 }
 0x247   : > { %v5117_v41 = vadd.f32 %v3532_v55, %v1982_v19 }
 0x248   : > { %3726 = vst.msk [vmem:[%s6602_s11 + $0x138] sm:$0xff] %vm3686_vm1, %v5116_v16 }
 0x249   : > { %3725 = vst.msk [vmem:[%s6602_s11 + $0x130] sm:$0xff] %vm3686_vm1, %v5117_v41  ;;  %v4576_v24 = vpop.f32.mrb[40].mxu1  ;;  %v4924_v47 = vpop.f32.mrb[40].mxu0 }
 0x24a   : > { %v5118_v7 = vadd.f32 %v4924_v47, %v4576_v24  ;;  %v1996_v15 = vpop.f32.mrb[41].mxu1  ;;  %v3544_v44 = vpop.f32.mrb[41].mxu0 }
 0x24b   : > { %v5119_v33 = vadd.f32 %v3544_v44, %v1996_v15 }
 0x24c   : > { %3728 = vst.msk [vmem:[%s6602_s11 + $0x148] sm:$0xff] %vm3686_vm1, %v5118_v7 }
 0x24d   : > { %3727 = vst.msk [vmem:[%s6602_s11 + $0x140] sm:$0xff] %vm3686_vm1, %v5119_v33  ;;  %v4579_v62 = vpop.f32.mrb[42].mxu1  ;;  %v4927_v31 = vpop.f32.mrb[42].mxu0 }
 0x24e   : > { %v5120_v42 = vadd.f32 %v4927_v31, %v4579_v62  ;;  %v2010_v43 = vpop.f32.mrb[43].mxu1  ;;  %v3556_v45 = vpop.f32.mrb[43].mxu0 }
 0x24f   : > { %v5121_v57 = vadd.f32 %v3556_v45, %v2010_v43 }
 0x250   : > { %3730 = vst.msk [vmem:[%s6602_s11 + $0x158] sm:$0xff] %vm3686_vm1, %v5120_v42 }
 0x251   : > { %3729 = vst.msk [vmem:[%s6602_s11 + $0x150] sm:$0xff] %vm3686_vm1, %v5121_v57  ;;  %v4582_v58 = vpop.f32.mrb[44].mxu1  ;;  %v4930_v59 = vpop.f32.mrb[44].mxu0 }
 0x252   : > { %v5122_v60 = vadd.f32 %v4930_v59, %v4582_v58  ;;  %v2024_v28 = vpop.f32.mrb[45].mxu1  ;;  %v3568_v38 = vpop.f32.mrb[45].mxu0 }
 0x253   : > { %v5123_v9 = vadd.f32 %v3568_v38, %v2024_v28 }
 0x254   : > { %3732 = vst.msk [vmem:[%s6602_s11 + $0x168] sm:$0xff] %vm3686_vm1, %v5122_v60 }
 0x255   : > { %3731 = vst.msk [vmem:[%s6602_s11 + $0x160] sm:$0xff] %vm3686_vm1, %v5123_v9  ;;  %v4585_v39 = vpop.f32.mrb[46].mxu1  ;;  %v4933_v48 = vpop.f32.mrb[46].mxu0 }
 0x256   : > { %v5124_v49 = vadd.f32 %v4933_v48, %v4585_v39  ;;  %v2038_v18 = vpop.f32.mrb[47].mxu1  ;;  %v3580_v61 = vpop.f32.mrb[47].mxu0 }
 0x257   : > { %v5125_v2 = vadd.f32 %v3580_v61, %v2038_v18 }
 0x258   : > { %3734 = vst.msk [vmem:[%s6602_s11 + $0x178] sm:$0xff] %vm3686_vm1, %v5124_v49 }
 0x259   : > { %3733 = vst.msk [vmem:[%s6602_s11 + $0x170] sm:$0xff] %vm3686_vm1, %v5125_v2  ;;  %v4588_v6 = vpop.f32.mrb[48].mxu1  ;;  %v4936_v10 = vpop.f32.mrb[48].mxu0 }
 0x25a   : > { %v5126_v34 = vadd.f32 %v4936_v10, %v4588_v6  ;;  %v2052_v13 = vpop.f32.mrb[49].mxu1  ;;  %v3592_v14 = vpop.f32.mrb[49].mxu0 }
 0x25b   : > { %v5127_v17 = vadd.f32 %v3592_v14, %v2052_v13 }
 0x25c   : > { %3736 = vst.msk [vmem:[%s6602_s11 + $0x188] sm:$0xff] %vm3686_vm1, %v5126_v34 }
 0x25d   : > { %3735 = vst.msk [vmem:[%s6602_s11 + $0x180] sm:$0xff] %vm3686_vm1, %v5127_v17  ;;  %v4591_v25 = vpop.f32.mrb[50].mxu1  ;;  %v4939_v26 = vpop.f32.mrb[50].mxu0 }
 0x25e   : > { %v5128_v29 = vadd.f32 %v4939_v26, %v4591_v25  ;;  %v2066_v30 = vpop.f32.mrb[51].mxu1  ;;  %v3604_v35 = vpop.f32.mrb[51].mxu0 }
 0x25f   : > { %v5129_v3 = vadd.f32 %v3604_v35, %v2066_v30 }
 0x260   : > { %3738 = vst.msk [vmem:[%s6602_s11 + $0x198] sm:$0xff] %vm3686_vm1, %v5128_v29 }
 0x261   : > { %3737 = vst.msk [vmem:[%s6602_s11 + $0x190] sm:$0xff] %vm3686_vm1, %v5129_v3  ;;  %v4594_v53 = vpop.f32.mrb[52].mxu1  ;;  %v4942_v51 = vpop.f32.mrb[52].mxu0 }
 0x262   : > { %v5130_v22 = vadd.f32 %v4942_v51, %v4594_v53  ;;  %v2080_v52 = vpop.f32.mrb[53].mxu1  ;;  %v3616_v50 = vpop.f32.mrb[53].mxu0 }
 0x263   : > { %v5131_v20 = vadd.f32 %v3616_v50, %v2080_v52 }
 0x264   : > { %3740 = vst.msk [vmem:[%s6602_s11 + $0x1a8] sm:$0xff] %vm3686_vm1, %v5130_v22 }
 0x265   : > { %3739 = vst.msk [vmem:[%s6602_s11 + $0x1a0] sm:$0xff] %vm3686_vm1, %v5131_v20  ;;  %v4597_v21 = vpop.f32.mrb[54].mxu1  ;;  %v4945_v37 = vpop.f32.mrb[54].mxu0 }
 0x266   : > { %v5132_v56 = vadd.f32 %v4945_v37, %v4597_v21  ;;  %v2094_v4 = vpop.f32.mrb[55].mxu1  ;;  %v3628_v12 = vpop.f32.mrb[55].mxu0 }
 0x267   : > { %v5133_v1 = vadd.f32 %v3628_v12, %v2094_v4 }
 0x268   : > { %3742 = vst.msk [vmem:[%s6602_s11 + $0x1b8] sm:$0xff] %vm3686_vm1, %v5132_v56 }
 0x269   : > { %3741 = vst.msk [vmem:[%s6602_s11 + $0x1b0] sm:$0xff] %vm3686_vm1, %v5133_v1  ;;  %v4600_v63 = vpop.f32.mrb[56].mxu1  ;;  %v4948_v23 = vpop.f32.mrb[56].mxu0 }
 0x26a   : > { %v5134_v11 = vadd.f32 %v4948_v23, %v4600_v63  ;;  %v2108_v8 = vpop.f32.mrb[57].mxu1  ;;  %v3640_v54 = vpop.f32.mrb[57].mxu0 }
 0x26b   : > { %v5135_v32 = vadd.f32 %v3640_v54, %v2108_v8 }
 0x26c   : > { %3744 = vst.msk [vmem:[%s6602_s11 + $0x1c8] sm:$0xff] %vm3686_vm1, %v5134_v11 }
 0x26d   : > { %3743 = vst.msk [vmem:[%s6602_s11 + $0x1c0] sm:$0xff] %vm3686_vm1, %v5135_v32  ;;  %v4603_v5 = vpop.f32.mrb[58].mxu1  ;;  %v4951_v36 = vpop.f32.mrb[58].mxu0 }
 0x26e   : > { %v5136_v40 = vadd.f32 %v4951_v36, %v4603_v5  ;;  %v2122_v46 = vpop.f32.mrb[59].mxu1  ;;  %v3652_v27 = vpop.f32.mrb[59].mxu0 }
 0x26f   : > { %v5137_v0 = vadd.f32 %v3652_v27, %v2122_v46 }
 0x270   : > { %3746 = vst.msk [vmem:[%s6602_s11 + $0x1d8] sm:$0xff] %vm3686_vm1, %v5136_v40 }
 0x271   : > { %3745 = vst.msk [vmem:[%s6602_s11 + $0x1d0] sm:$0xff] %vm3686_vm1, %v5137_v0  ;;  %v4606_v16 = vpop.f32.mrb[60].mxu1  ;;  %v4954_v19 = vpop.f32.mrb[60].mxu0 }
 0x272   : > { %v5138_v55 = vadd.f32 %v4954_v19, %v4606_v16  ;;  %v2136_v41 = vpop.f32.mrb[61].mxu1  ;;  %v3664_v24 = vpop.f32.mrb[61].mxu0 }
 0x273   : > { %v5139_v47 = vadd.f32 %v3664_v24, %v2136_v41 }
 0x274   : > { %3748 = vst.msk [vmem:[%s6602_s11 + $0x1e8] sm:$0xff] %vm3686_vm1, %v5138_v55 }
 0x275   : > { %3747 = vst.msk [vmem:[%s6602_s11 + $0x1e0] sm:$0xff] %vm3686_vm1, %v5139_v47  ;;  %v4609_v7 = vpop.f32.mrb[62].mxu1  ;;  %v4957_v15 = vpop.f32.mrb[62].mxu0 }
 0x276   : > { %v5140_v44 = vadd.f32 %v4957_v15, %v4609_v7  ;;  %v2150_v33 = vpop.f32.mrb[63].mxu1  ;;  %v3676_v62 = vpop.f32.mrb[63].mxu0 }
 0x277   : > { %v5141_v31 = vadd.f32 %v3676_v62, %v2150_v33 }
 0x278   : > { %3750 = vst.msk [vmem:[%s6602_s11 + $0x1f8] sm:$0xff] %vm3686_vm1, %v5140_v44 }
 0x279   : > { %3749 = vst.msk [vmem:[%s6602_s11 + $0x1f0] sm:$0xff] %vm3686_vm1, %v5141_v31 }
 0x27a PF: > { %s12_s9 = sadd.s32 1, %s5412_s9  }
 0x27b   : > { %p9_p4 = scmp.ge.s32.totalorder %s12_s9, 4  }
 0x27d   :  { %11 = sbr.rel (!%p9_p4) target bundleno = 1 (0x1), region = 58 }

</bundles_post_ra>
